<compile_context>
chip_gen: v5e
topology: v5e:2x2
jax: 0.10.0
libtpu: 0.0.40
codegen_flags: <defaults>
</compile_context>

<pallas_src>
import jax
import jax.numpy as jnp
from jax import lax
from jax.experimental import pallas as pl
from jax.experimental.pallas import tpu as pltpu

HIDDEN = 4  # nn.LSTM(hidden_size=4)


def _speech_lstm_kernel(x_ref, wih_ref, b_ref, whh_ref, wfc_ref, bfc_ref,
                        out_ref, h_scr, c_scr, hs_scr):
    """One (batch-block, time-chunk) grid step of LSTM(1->H) + Linear(H->C).

    x_ref  : [bb, Tc]     raw input chunk (batch in sublanes, time in lanes)
    wih_ref: [1, 4H]      W_ih[:, 0], gate rows permuted to (i, f, o, g)
    b_ref  : [1, 4H]      b_ih + b_hh, same permutation
    whh_ref: [H, 4H]      W_hh^T, gate columns permuted to (i, f, o, g)
    wfc_ref: [1, C, H]    W_fc
    bfc_ref: [1, C, 1]    b_fc
    out_ref: [bb, C, Tc]  lane-dense output chunk (time in lanes)
    h_scr, c_scr: [bb, H] recurrent state persisted across time-chunks
    hs_scr : [bb, H, Tc]  per-chunk hidden-state buffer for the hoisted FC
    """
    bb, Tc = x_ref.shape
    H = h_scr.shape[1]
    G = 4 * H
    C = out_ref.shape[1]

    # Recurrent state is zero at the start of each sequence (time-chunk 0);
    # otherwise it carries over from the previous chunk via scratch.
    @pl.when(pl.program_id(1) == 0)
    def _():
        h_scr[...] = jnp.zeros_like(h_scr)
        c_scr[...] = jnp.zeros_like(c_scr)

    # Loop-invariant broadcasts hoisted out of the unrolled step loop
    # (JAX does not CSE broadcast_in_dim -> would re-materialize every step).
    wih_b = jnp.broadcast_to(wih_ref[...], (bb, G))
    bias_b = jnp.broadcast_to(b_ref[...], (bb, G))
    whh = whh_ref[...]
    whh_rows = [jnp.broadcast_to(whh[k:k + 1, :], (bb, G)) for k in range(H)]

    # (h, c) live in vregs as loop-carry values during the chunk.
    h = h_scr[...]
    c = c_scr[...]

    for tt in range(Tc):  # static unroll over the chunk (Tc bounded by t_chunk)
        x_col = x_ref[:, tt:tt + 1]                       # [bb, 1]
        # gates = x_t * W_ih^T + (b_ih + b_hh) + h @ W_hh^T as VPU broadcast
        # FMAs (no tiny MXU matmul on the h->h critical path).
        gates = x_col * wih_b + bias_b                    # [bb, 4H]
        for k in range(H):
            gates = gates + h[:, k:k + 1] * whh_rows[k]

        # Gate order (i, f, o, g): one sigmoid over 3H lanes + one tanh over H.
        sig = jax.nn.sigmoid(gates[:, :3 * H])            # [bb, 3H]
        g_g = jnp.tanh(gates[:, 3 * H:])                  # [bb, H]
        i_g = sig[:, 0 * H:1 * H]
        f_g = sig[:, 1 * H:2 * H]
        o_g = sig[:, 2 * H:3 * H]

        c = f_g * c + i_g * g_g
        h = o_g * jnp.tanh(c)

        # Buffer h for the hoisted FC (off the recurrent critical path).
        hs_scr[:, :, tt:tt + 1] = h[:, :, None]

    # Persist recurrent state for the next time-chunk.
    h_scr[...] = h
    c_scr[...] = c

    # FC hoisted out of the recurrence: H broadcast-FMAs over the whole
    # [bb, C, Tc] slab; the lane (last) dim is time, so stores are lane-dense.
    wfc = wfc_ref[...]                                    # [1, C, H]
    out = jnp.broadcast_to(bfc_ref[...], (bb, C, Tc))
    for k in range(H):
        out = out + wfc[:, :, k:k + 1] * hs_scr[:, k:k + 1, :]
    out_ref[...] = out


def speech_model_forward(x, params, *, t_chunk=None):
    """x: [B, T] float32 -> [B, T, num_classes], matching SpeechModel.forward."""
    w_ih, w_hh, b_ih, b_hh, w_fc, b_fc = params
    B, T = x.shape
    H = HIDDEN
    C = w_fc.shape[0]
    assert w_ih.shape == (4 * H, 1), "kernel assumes LSTM input_size == 1"

    # Time-chunk size: 128-step chunks when T allows, otherwise the whole
    # sequence (bounds unrolled code size / VMEM residency for long sequences).
    # TODO(synk): pad T to a multiple of 128 (and mask) for ragged lengths.
    if t_chunk is None:
        t_chunk = 128 if (T % 128 == 0) else T
    assert T % t_chunk == 0

    # Permute gate rows from torch order (i, f, g, o) to (i, f, o, g) so the
    # kernel applies sigmoid to the first 3H gate lanes and tanh to the last H.
    perm = jnp.concatenate([
        jnp.arange(0 * H, 1 * H),   # i
        jnp.arange(1 * H, 2 * H),   # f
        jnp.arange(3 * H, 4 * H),   # o
        jnp.arange(2 * H, 3 * H),   # g
    ])
    f32 = jnp.float32
    wih_row = w_ih[perm, 0][None, :].astype(f32)           # [1, 4H]
    bias_row = (b_ih + b_hh)[perm][None, :].astype(f32)    # [1, 4H]
    whh_t = jnp.transpose(w_hh[perm, :]).astype(f32)       # [H, 4H]
    wfc3 = w_fc[None, :, :].astype(f32)                    # [1, C, H]
    bfc3 = b_fc[None, :, None].astype(f32)                 # [1, C, 1]
    x = x.astype(f32)

    b_block = B  # single batch block at these sizes; axis stays "parallel" so
    #              larger batches can shard across v7x's two TensorCores.
    grid = (B // b_block, T // t_chunk)

    out_bct = pl.pallas_call(
        _speech_lstm_kernel,
        out_shape=jax.ShapeDtypeStruct((B, C, T), f32),
        grid_spec=pltpu.PrefetchScalarGridSpec(
            num_scalar_prefetch=0,
            grid=grid,
            in_specs=[
                pl.BlockSpec((b_block, t_chunk), lambda b, t: (b, t)),   # x
                pl.BlockSpec((1, 4 * H), lambda b, t: (0, 0)),           # W_ih col
                pl.BlockSpec((1, 4 * H), lambda b, t: (0, 0)),           # b_ih+b_hh
                pl.BlockSpec((H, 4 * H), lambda b, t: (0, 0)),           # W_hh^T
                pl.BlockSpec((1, C, H), lambda b, t: (0, 0, 0)),         # W_fc
                pl.BlockSpec((1, C, 1), lambda b, t: (0, 0, 0)),         # b_fc
            ],
            out_specs=pl.BlockSpec((b_block, C, t_chunk),
                                   lambda b, t: (b, 0, t)),
            scratch_shapes=[
                pltpu.VMEM((b_block, H), f32),            # h (across chunks)
                pltpu.VMEM((b_block, H), f32),            # c (across chunks)
                pltpu.VMEM((b_block, H, t_chunk), f32),   # per-chunk hidden states
            ],
        ),
        compiler_params=pltpu.CompilerParams(
            dimension_semantics=("parallel", "arbitrary"),
            vmem_limit_bytes=32 * 1024 * 1024,
        ),
    )(x, wih_row, bias_row, whh_t, wfc3, bfc3)

    # [B, C, T] -> [B, T, C]: wrapper-side layout plumbing so the kernel's
    # output stores stay lane-dense (time in lanes) instead of masked
    # num_classes-wide partial stores.
    return jnp.transpose(out_bct, (0, 2, 1))


def speech_model_reference(x, params):
    """Pure-JAX reference mirroring torch.nn.LSTM + Linear semantics."""
    w_ih, w_hh, b_ih, b_hh, w_fc, b_fc = params
    B, T = x.shape
    H = HIDDEN

    def step(carry, x_t):
        h, c = carry
        gates = x_t[:, None] @ w_ih.T + h @ w_hh.T + b_ih + b_hh   # [B, 4H]
        i = jax.nn.sigmoid(gates[:, 0 * H:1 * H])
        f = jax.nn.sigmoid(gates[:, 1 * H:2 * H])
        g = jnp.tanh(gates[:, 2 * H:3 * H])
        o = jax.nn.sigmoid(gates[:, 3 * H:4 * H])
        c = f * c + i * g
        h = o * jnp.tanh(c)
        return (h, c), h

    init = (jnp.zeros((B, H), jnp.float32), jnp.zeros((B, H), jnp.float32))
    _, hs = lax.scan(step, init, jnp.transpose(x))               # hs: [T, B, H]
    hs = jnp.transpose(hs, (1, 0, 2))                            # [B, T, H]
    return hs @ w_fc.T + b_fc                                    # [B, T, C]


def init_params(key, num_classes):
    H = HIDDEN
    ks = jax.random.split(key, 6)
    scale = 1.0 / jnp.sqrt(H)
    w_ih = jax.random.uniform(ks[0], (4 * H, 1), jnp.float32, -scale, scale)
    w_hh = jax.random.uniform(ks[1], (4 * H, H), jnp.float32, -scale, scale)
    b_ih = jax.random.uniform(ks[2], (4 * H,), jnp.float32, -scale, scale)
    b_hh = jax.random.uniform(ks[3], (4 * H,), jnp.float32, -scale, scale)
    w_fc = jax.random.uniform(ks[4], (num_classes, H), jnp.float32, -scale, scale)
    b_fc = jax.random.uniform(ks[5], (num_classes,), jnp.float32, -scale, scale)
    return (w_ih, w_hh, b_ih, b_hh, w_fc, b_fc)


if __name__ == "__main__":
    B, T, NUM_CLASSES = 2, 8, 5

    key = jax.random.PRNGKey(0)
    k_x, k_p = jax.random.split(key)
    x = jax.random.normal(k_x, (B, T), jnp.float32)
    params = init_params(k_p, NUM_CLASSES)

    out = speech_model_forward(x, params)
    out = jax.block_until_ready(out)

    ref = speech_model_reference(x, params)
    assert out.shape == (B, T, NUM_CLASSES), out.shape
    assert jnp.allclose(out, ref, atol=1e-5, rtol=1e-5), \
        f"max err {jnp.max(jnp.abs(out - ref))}"

    print("KERNEL_OK")
</pallas_src>

<mosaic_0001>
module attributes {stable_mosaic.version = 11 : i64} {
  func.func @_speech_lstm_kernel(%arg0: i32, %arg1: i32, %arg2: memref<2x8xf32, #tpu.memory_space<vmem>>, %arg3: memref<1x16xf32, #tpu.memory_space<vmem>>, %arg4: memref<1x16xf32, #tpu.memory_space<vmem>>, %arg5: memref<4x16xf32, #tpu.memory_space<vmem>>, %arg6: memref<1x5x4xf32, #tpu.memory_space<vmem>>, %arg7: memref<1x5x1xf32, #tpu.memory_space<vmem>>, %arg8: memref<2x5x8xf32, #tpu.memory_space<vmem>>, %arg9: memref<2x4xf32, #tpu.memory_space<vmem>>, %arg10: memref<2x4xf32, #tpu.memory_space<vmem>>, %arg11: memref<2x4x8xf32, #tpu.memory_space<vmem>>) attributes {dimension_semantics = [#tpu.dimension_semantics<parallel>, #tpu.dimension_semantics<arbitrary>], iteration_bounds = array<i64: 1, 1>, scalar_prefetch = 0 : i64, scratch_operands = 3 : i64, tpu.core_type = #tpu.core_type<tc>, window_params = [{transform_indices = @transform_0, window_bounds = array<i64: 2, 8>}, {pipeline_mode = #tpu.pipeline_mode<synchronous>, transform_indices = @transform_1, window_bounds = array<i64: 1, 16>}, {pipeline_mode = #tpu.pipeline_mode<synchronous>, transform_indices = @transform_2, window_bounds = array<i64: 1, 16>}, {pipeline_mode = #tpu.pipeline_mode<synchronous>, transform_indices = @transform_3, window_bounds = array<i64: 4, 16>}, {pipeline_mode = #tpu.pipeline_mode<synchronous>, transform_indices = @transform_4, window_bounds = array<i64: 1, 5, 4>}, {pipeline_mode = #tpu.pipeline_mode<synchronous>, transform_indices = @transform_5, window_bounds = array<i64: 1, 5, 1>}, {transform_indices = @transform_6, window_bounds = array<i64: 2, 5, 8>}]} {
    %c0_i32 = arith.constant 0 : i32
    %0 = arith.cmpi eq, %arg1, %c0_i32 : i32
    %1 = arith.extui %0 : i1 to i32
    %c0_i32_0 = arith.constant 0 : i32
    %2 = arith.cmpi ne, %1, %c0_i32_0 : i32
    scf.if %2 {
      %cst_75 = arith.constant 0.000000e+00 : f32
      %359 = vector.broadcast %cst_75 : f32 to vector<2x4xf32>
      %c0_76 = arith.constant 0 : index
      %c0_77 = arith.constant 0 : index
      %360 = vector.load %arg9[%c0_76, %c0_77] : memref<2x4xf32, #tpu.memory_space<vmem>>, vector<2x4xf32>
      tpu.vector_store %arg9[%c0_76, %c0_77], %359 {strides = array<i32>} : memref<2x4xf32, #tpu.memory_space<vmem>>, vector<2x4xf32>,
      %cst_78 = arith.constant 0.000000e+00 : f32
      %361 = vector.broadcast %cst_78 : f32 to vector<2x4xf32>
      %c0_79 = arith.constant 0 : index
      %c0_80 = arith.constant 0 : index
      %362 = vector.load %arg10[%c0_79, %c0_80] : memref<2x4xf32, #tpu.memory_space<vmem>>, vector<2x4xf32>
      tpu.vector_store %arg10[%c0_79, %c0_80], %361 {strides = array<i32>} : memref<2x4xf32, #tpu.memory_space<vmem>>, vector<2x4xf32>,
    } else {
    }
    %c0 = arith.constant 0 : index
    %c0_1 = arith.constant 0 : index
    %3 = vector.load %arg3[%c0, %c0_1] : memref<1x16xf32, #tpu.memory_space<vmem>>, vector<1x16xf32>
    %4 = vector.shape_cast %3 : vector<1x16xf32> to vector<1x16xf32>
    %5 = vector.broadcast %4 : vector<1x16xf32> to vector<2x16xf32>
    %c0_2 = arith.constant 0 : index
    %c0_3 = arith.constant 0 : index
    %6 = vector.load %arg4[%c0_2, %c0_3] : memref<1x16xf32, #tpu.memory_space<vmem>>, vector<1x16xf32>
    %7 = vector.shape_cast %6 : vector<1x16xf32> to vector<1x16xf32>
    %8 = vector.broadcast %7 : vector<1x16xf32> to vector<2x16xf32>
    %c0_4 = arith.constant 0 : index
    %c0_5 = arith.constant 0 : index
    %9 = vector.load %arg5[%c0_4, %c0_5] : memref<4x16xf32, #tpu.memory_space<vmem>>, vector<4x16xf32>
    %10 = vector.extract_strided_slice %9 {offsets = [0, 0], sizes = [1, 16], strides = [1, 1]} : vector<4x16xf32> to vector<1x16xf32>
    %11 = vector.shape_cast %10 : vector<1x16xf32> to vector<1x16xf32>
    %12 = vector.broadcast %11 : vector<1x16xf32> to vector<2x16xf32>
    %13 = vector.extract_strided_slice %9 {offsets = [1, 0], sizes = [1, 16], strides = [1, 1]} : vector<4x16xf32> to vector<1x16xf32>
    %14 = vector.shape_cast %13 : vector<1x16xf32> to vector<1x16xf32>
    %15 = vector.broadcast %14 : vector<1x16xf32> to vector<2x16xf32>
    %16 = vector.extract_strided_slice %9 {offsets = [2, 0], sizes = [1, 16], strides = [1, 1]} : vector<4x16xf32> to vector<1x16xf32>
    %17 = vector.shape_cast %16 : vector<1x16xf32> to vector<1x16xf32>
    %18 = vector.broadcast %17 : vector<1x16xf32> to vector<2x16xf32>
    %19 = vector.extract_strided_slice %9 {offsets = [3, 0], sizes = [1, 16], strides = [1, 1]} : vector<4x16xf32> to vector<1x16xf32>
    %20 = vector.shape_cast %19 : vector<1x16xf32> to vector<1x16xf32>
    %21 = vector.broadcast %20 : vector<1x16xf32> to vector<2x16xf32>
    %c0_6 = arith.constant 0 : index
    %c0_7 = arith.constant 0 : index
    %22 = vector.load %arg9[%c0_6, %c0_7] : memref<2x4xf32, #tpu.memory_space<vmem>>, vector<2x4xf32>
    %c0_8 = arith.constant 0 : index
    %c0_9 = arith.constant 0 : index
    %23 = vector.load %arg10[%c0_8, %c0_9] : memref<2x4xf32, #tpu.memory_space<vmem>>, vector<2x4xf32>
    %c0_10 = arith.constant 0 : index
    %c0_11 = arith.constant 0 : index
    %24 = vector.load %arg2[%c0_10, %c0_11] : memref<2x8xf32, #tpu.memory_space<vmem>>, vector<2x1xf32>
    %25 = vector.broadcast %24 : vector<2x1xf32> to vector<2x16xf32>
    %26 = arith.mulf %25, %5 : vector<2x16xf32>
    %27 = arith.addf %26, %8 : vector<2x16xf32>
    %28 = vector.extract_strided_slice %22 {offsets = [0, 0], sizes = [2, 1], strides = [1, 1]} : vector<2x4xf32> to vector<2x1xf32>
    %29 = vector.broadcast %28 : vector<2x1xf32> to vector<2x16xf32>
    %30 = arith.mulf %29, %12 : vector<2x16xf32>
    %31 = arith.addf %27, %30 : vector<2x16xf32>
    %32 = vector.extract_strided_slice %22 {offsets = [0, 1], sizes = [2, 1], strides = [1, 1]} : vector<2x4xf32> to vector<2x1xf32>
    %33 = vector.broadcast %32 : vector<2x1xf32> to vector<2x16xf32>
    %34 = arith.mulf %33, %15 : vector<2x16xf32>
    %35 = arith.addf %31, %34 : vector<2x16xf32>
    %36 = vector.extract_strided_slice %22 {offsets = [0, 2], sizes = [2, 1], strides = [1, 1]} : vector<2x4xf32> to vector<2x1xf32>
    %37 = vector.broadcast %36 : vector<2x1xf32> to vector<2x16xf32>
    %38 = arith.mulf %37, %18 : vector<2x16xf32>
    %39 = arith.addf %35, %38 : vector<2x16xf32>
    %40 = vector.extract_strided_slice %22 {offsets = [0, 3], sizes = [2, 1], strides = [1, 1]} : vector<2x4xf32> to vector<2x1xf32>
    %41 = vector.broadcast %40 : vector<2x1xf32> to vector<2x16xf32>
    %42 = arith.mulf %41, %21 : vector<2x16xf32>
    %43 = arith.addf %39, %42 : vector<2x16xf32>
    %44 = vector.extract_strided_slice %43 {offsets = [0, 0], sizes = [2, 12], strides = [1, 1]} : vector<2x16xf32> to vector<2x12xf32>
    %45 = arith.negf %44 : vector<2x12xf32>
    %46 = math.exp %45 : vector<2x12xf32>
    %cst = arith.constant 1.000000e+00 : f32
    %47 = vector.broadcast %cst : f32 to vector<2x12xf32>
    %48 = arith.addf %47, %46 : vector<2x12xf32>
    %49 = arith.divf %47, %48 : vector<2x12xf32>
    %50 = vector.extract_strided_slice %43 {offsets = [0, 12], sizes = [2, 4], strides = [1, 1]} : vector<2x16xf32> to vector<2x4xf32>
    %51 = math.tanh %50 : vector<2x4xf32>
    %52 = vector.extract_strided_slice %49 {offsets = [0, 0], sizes = [2, 4], strides = [1, 1]} : vector<2x12xf32> to vector<2x4xf32>
    %53 = vector.extract_strided_slice %49 {offsets = [0, 4], sizes = [2, 4], strides = [1, 1]} : vector<2x12xf32> to vector<2x4xf32>
    %54 = vector.extract_strided_slice %49 {offsets = [0, 8], sizes = [2, 4], strides = [1, 1]} : vector<2x12xf32> to vector<2x4xf32>
    %55 = arith.mulf %53, %23 : vector<2x4xf32>
    %56 = arith.mulf %52, %51 : vector<2x4xf32>
    %57 = arith.addf %55, %56 : vector<2x4xf32>
    %58 = math.tanh %57 : vector<2x4xf32>
    %59 = arith.mulf %54, %58 : vector<2x4xf32>
    %60 = vector.shape_cast %59 : vector<2x4xf32> to vector<2x4x1xf32>
    %c0_12 = arith.constant 0 : index
    %c0_13 = arith.constant 0 : index
    %c0_14 = arith.constant 0 : index
    %61 = vector.load %arg11[%c0_12, %c0_13, %c0_14] : memref<2x4x8xf32, #tpu.memory_space<vmem>>, vector<2x4x1xf32>
    tpu.vector_store %arg11[%c0_12, %c0_13, %c0_14], %60 {strides = array<i32>} : memref<2x4x8xf32, #tpu.memory_space<vmem>>, vector<2x4x1xf32>,
    %c0_15 = arith.constant 0 : index
    %c1 = arith.constant 1 : index
    %62 = vector.load %arg2[%c0_15, %c1] : memref<2x8xf32, #tpu.memory_space<vmem>>, vector<2x1xf32>
    %63 = vector.broadcast %62 : vector<2x1xf32> to vector<2x16xf32>
    %64 = arith.mulf %63, %5 : vector<2x16xf32>
    %65 = arith.addf %64, %8 : vector<2x16xf32>
    %66 = vector.extract_strided_slice %59 {offsets = [0, 0], sizes = [2, 1], strides = [1, 1]} : vector<2x4xf32> to vector<2x1xf32>
    %67 = vector.broadcast %66 : vector<2x1xf32> to vector<2x16xf32>
    %68 = arith.mulf %67, %12 : vector<2x16xf32>
    %69 = arith.addf %65, %68 : vector<2x16xf32>
    %70 = vector.extract_strided_slice %59 {offsets = [0, 1], sizes = [2, 1], strides = [1, 1]} : vector<2x4xf32> to vector<2x1xf32>
    %71 = vector.broadcast %70 : vector<2x1xf32> to vector<2x16xf32>
    %72 = arith.mulf %71, %15 : vector<2x16xf32>
    %73 = arith.addf %69, %72 : vector<2x16xf32>
    %74 = vector.extract_strided_slice %59 {offsets = [0, 2], sizes = [2, 1], strides = [1, 1]} : vector<2x4xf32> to vector<2x1xf32>
    %75 = vector.broadcast %74 : vector<2x1xf32> to vector<2x16xf32>
    %76 = arith.mulf %75, %18 : vector<2x16xf32>
    %77 = arith.addf %73, %76 : vector<2x16xf32>
    %78 = vector.extract_strided_slice %59 {offsets = [0, 3], sizes = [2, 1], strides = [1, 1]} : vector<2x4xf32> to vector<2x1xf32>
    %79 = vector.broadcast %78 : vector<2x1xf32> to vector<2x16xf32>
    %80 = arith.mulf %79, %21 : vector<2x16xf32>
    %81 = arith.addf %77, %80 : vector<2x16xf32>
    %82 = vector.extract_strided_slice %81 {offsets = [0, 0], sizes = [2, 12], strides = [1, 1]} : vector<2x16xf32> to vector<2x12xf32>
    %83 = arith.negf %82 : vector<2x12xf32>
    %84 = math.exp %83 : vector<2x12xf32>
    %cst_16 = arith.constant 1.000000e+00 : f32
    %85 = vector.broadcast %cst_16 : f32 to vector<2x12xf32>
    %86 = arith.addf %85, %84 : vector<2x12xf32>
    %87 = arith.divf %85, %86 : vector<2x12xf32>
    %88 = vector.extract_strided_slice %81 {offsets = [0, 12], sizes = [2, 4], strides = [1, 1]} : vector<2x16xf32> to vector<2x4xf32>
    %89 = math.tanh %88 : vector<2x4xf32>
    %90 = vector.extract_strided_slice %87 {offsets = [0, 0], sizes = [2, 4], strides = [1, 1]} : vector<2x12xf32> to vector<2x4xf32>
    %91 = vector.extract_strided_slice %87 {offsets = [0, 4], sizes = [2, 4], strides = [1, 1]} : vector<2x12xf32> to vector<2x4xf32>
    %92 = vector.extract_strided_slice %87 {offsets = [0, 8], sizes = [2, 4], strides = [1, 1]} : vector<2x12xf32> to vector<2x4xf32>
    %93 = arith.mulf %91, %57 : vector<2x4xf32>
    %94 = arith.mulf %90, %89 : vector<2x4xf32>
    %95 = arith.addf %93, %94 : vector<2x4xf32>
    %96 = math.tanh %95 : vector<2x4xf32>
    %97 = arith.mulf %92, %96 : vector<2x4xf32>
    %98 = vector.shape_cast %97 : vector<2x4xf32> to vector<2x4x1xf32>
    %c0_17 = arith.constant 0 : index
    %c0_18 = arith.constant 0 : index
    %c1_19 = arith.constant 1 : index
    %99 = vector.load %arg11[%c0_17, %c0_18, %c1_19] : memref<2x4x8xf32, #tpu.memory_space<vmem>>, vector<2x4x1xf32>
    tpu.vector_store %arg11[%c0_17, %c0_18, %c1_19], %98 {strides = array<i32>} : memref<2x4x8xf32, #tpu.memory_space<vmem>>, vector<2x4x1xf32>,
    %c0_20 = arith.constant 0 : index
    %c2 = arith.constant 2 : index
    %100 = vector.load %arg2[%c0_20, %c2] : memref<2x8xf32, #tpu.memory_space<vmem>>, vector<2x1xf32>
    %101 = vector.broadcast %100 : vector<2x1xf32> to vector<2x16xf32>
    %102 = arith.mulf %101, %5 : vector<2x16xf32>
    %103 = arith.addf %102, %8 : vector<2x16xf32>
    %104 = vector.extract_strided_slice %97 {offsets = [0, 0], sizes = [2, 1], strides = [1, 1]} : vector<2x4xf32> to vector<2x1xf32>
    %105 = vector.broadcast %104 : vector<2x1xf32> to vector<2x16xf32>
    %106 = arith.mulf %105, %12 : vector<2x16xf32>
    %107 = arith.addf %103, %106 : vector<2x16xf32>
    %108 = vector.extract_strided_slice %97 {offsets = [0, 1], sizes = [2, 1], strides = [1, 1]} : vector<2x4xf32> to vector<2x1xf32>
    %109 = vector.broadcast %108 : vector<2x1xf32> to vector<2x16xf32>
    %110 = arith.mulf %109, %15 : vector<2x16xf32>
    %111 = arith.addf %107, %110 : vector<2x16xf32>
    %112 = vector.extract_strided_slice %97 {offsets = [0, 2], sizes = [2, 1], strides = [1, 1]} : vector<2x4xf32> to vector<2x1xf32>
    %113 = vector.broadcast %112 : vector<2x1xf32> to vector<2x16xf32>
    %114 = arith.mulf %113, %18 : vector<2x16xf32>
    %115 = arith.addf %111, %114 : vector<2x16xf32>
    %116 = vector.extract_strided_slice %97 {offsets = [0, 3], sizes = [2, 1], strides = [1, 1]} : vector<2x4xf32> to vector<2x1xf32>
    %117 = vector.broadcast %116 : vector<2x1xf32> to vector<2x16xf32>
    %118 = arith.mulf %117, %21 : vector<2x16xf32>
    %119 = arith.addf %115, %118 : vector<2x16xf32>
    %120 = vector.extract_strided_slice %119 {offsets = [0, 0], sizes = [2, 12], strides = [1, 1]} : vector<2x16xf32> to vector<2x12xf32>
    %121 = arith.negf %120 : vector<2x12xf32>
    %122 = math.exp %121 : vector<2x12xf32>
    %cst_21 = arith.constant 1.000000e+00 : f32
    %123 = vector.broadcast %cst_21 : f32 to vector<2x12xf32>
    %124 = arith.addf %123, %122 : vector<2x12xf32>
    %125 = arith.divf %123, %124 : vector<2x12xf32>
    %126 = vector.extract_strided_slice %119 {offsets = [0, 12], sizes = [2, 4], strides = [1, 1]} : vector<2x16xf32> to vector<2x4xf32>
    %127 = math.tanh %126 : vector<2x4xf32>
    %128 = vector.extract_strided_slice %125 {offsets = [0, 0], sizes = [2, 4], strides = [1, 1]} : vector<2x12xf32> to vector<2x4xf32>
    %129 = vector.extract_strided_slice %125 {offsets = [0, 4], sizes = [2, 4], strides = [1, 1]} : vector<2x12xf32> to vector<2x4xf32>
    %130 = vector.extract_strided_slice %125 {offsets = [0, 8], sizes = [2, 4], strides = [1, 1]} : vector<2x12xf32> to vector<2x4xf32>
    %131 = arith.mulf %129, %95 : vector<2x4xf32>
    %132 = arith.mulf %128, %127 : vector<2x4xf32>
    %133 = arith.addf %131, %132 : vector<2x4xf32>
    %134 = math.tanh %133 : vector<2x4xf32>
    %135 = arith.mulf %130, %134 : vector<2x4xf32>
    %136 = vector.shape_cast %135 : vector<2x4xf32> to vector<2x4x1xf32>
    %c0_22 = arith.constant 0 : index
    %c0_23 = arith.constant 0 : index
    %c2_24 = arith.constant 2 : index
    %137 = vector.load %arg11[%c0_22, %c0_23, %c2_24] : memref<2x4x8xf32, #tpu.memory_space<vmem>>, vector<2x4x1xf32>
    tpu.vector_store %arg11[%c0_22, %c0_23, %c2_24], %136 {strides = array<i32>} : memref<2x4x8xf32, #tpu.memory_space<vmem>>, vector<2x4x1xf32>,
    %c0_25 = arith.constant 0 : index
    %c3 = arith.constant 3 : index
    %138 = vector.load %arg2[%c0_25, %c3] : memref<2x8xf32, #tpu.memory_space<vmem>>, vector<2x1xf32>
    %139 = vector.broadcast %138 : vector<2x1xf32> to vector<2x16xf32>
    %140 = arith.mulf %139, %5 : vector<2x16xf32>
    %141 = arith.addf %140, %8 : vector<2x16xf32>
    %142 = vector.extract_strided_slice %135 {offsets = [0, 0], sizes = [2, 1], strides = [1, 1]} : vector<2x4xf32> to vector<2x1xf32>
    %143 = vector.broadcast %142 : vector<2x1xf32> to vector<2x16xf32>
    %144 = arith.mulf %143, %12 : vector<2x16xf32>
    %145 = arith.addf %141, %144 : vector<2x16xf32>
    %146 = vector.extract_strided_slice %135 {offsets = [0, 1], sizes = [2, 1], strides = [1, 1]} : vector<2x4xf32> to vector<2x1xf32>
    %147 = vector.broadcast %146 : vector<2x1xf32> to vector<2x16xf32>
    %148 = arith.mulf %147, %15 : vector<2x16xf32>
    %149 = arith.addf %145, %148 : vector<2x16xf32>
    %150 = vector.extract_strided_slice %135 {offsets = [0, 2], sizes = [2, 1], strides = [1, 1]} : vector<2x4xf32> to vector<2x1xf32>
    %151 = vector.broadcast %150 : vector<2x1xf32> to vector<2x16xf32>
    %152 = arith.mulf %151, %18 : vector<2x16xf32>
    %153 = arith.addf %149, %152 : vector<2x16xf32>
    %154 = vector.extract_strided_slice %135 {offsets = [0, 3], sizes = [2, 1], strides = [1, 1]} : vector<2x4xf32> to vector<2x1xf32>
    %155 = vector.broadcast %154 : vector<2x1xf32> to vector<2x16xf32>
    %156 = arith.mulf %155, %21 : vector<2x16xf32>
    %157 = arith.addf %153, %156 : vector<2x16xf32>
    %158 = vector.extract_strided_slice %157 {offsets = [0, 0], sizes = [2, 12], strides = [1, 1]} : vector<2x16xf32> to vector<2x12xf32>
    %159 = arith.negf %158 : vector<2x12xf32>
    %160 = math.exp %159 : vector<2x12xf32>
    %cst_26 = arith.constant 1.000000e+00 : f32
    %161 = vector.broadcast %cst_26 : f32 to vector<2x12xf32>
    %162 = arith.addf %161, %160 : vector<2x12xf32>
    %163 = arith.divf %161, %162 : vector<2x12xf32>
    %164 = vector.extract_strided_slice %157 {offsets = [0, 12], sizes = [2, 4], strides = [1, 1]} : vector<2x16xf32> to vector<2x4xf32>
    %165 = math.tanh %164 : vector<2x4xf32>
    %166 = vector.extract_strided_slice %163 {offsets = [0, 0], sizes = [2, 4], strides = [1, 1]} : vector<2x12xf32> to vector<2x4xf32>
    %167 = vector.extract_strided_slice %163 {offsets = [0, 4], sizes = [2, 4], strides = [1, 1]} : vector<2x12xf32> to vector<2x4xf32>
    %168 = vector.extract_strided_slice %163 {offsets = [0, 8], sizes = [2, 4], strides = [1, 1]} : vector<2x12xf32> to vector<2x4xf32>
    %169 = arith.mulf %167, %133 : vector<2x4xf32>
    %170 = arith.mulf %166, %165 : vector<2x4xf32>
    %171 = arith.addf %169, %170 : vector<2x4xf32>
    %172 = math.tanh %171 : vector<2x4xf32>
    %173 = arith.mulf %168, %172 : vector<2x4xf32>
    %174 = vector.shape_cast %173 : vector<2x4xf32> to vector<2x4x1xf32>
    %c0_27 = arith.constant 0 : index
    %c0_28 = arith.constant 0 : index
    %c3_29 = arith.constant 3 : index
    %175 = vector.load %arg11[%c0_27, %c0_28, %c3_29] : memref<2x4x8xf32, #tpu.memory_space<vmem>>, vector<2x4x1xf32>
    tpu.vector_store %arg11[%c0_27, %c0_28, %c3_29], %174 {strides = array<i32>} : memref<2x4x8xf32, #tpu.memory_space<vmem>>, vector<2x4x1xf32>,
    %c0_30 = arith.constant 0 : index
    %c4 = arith.constant 4 : index
    %176 = vector.load %arg2[%c0_30, %c4] : memref<2x8xf32, #tpu.memory_space<vmem>>, vector<2x1xf32>
    %177 = vector.broadcast %176 : vector<2x1xf32> to vector<2x16xf32>
    %178 = arith.mulf %177, %5 : vector<2x16xf32>
    %179 = arith.addf %178, %8 : vector<2x16xf32>
    %180 = vector.extract_strided_slice %173 {offsets = [0, 0], sizes = [2, 1], strides = [1, 1]} : vector<2x4xf32> to vector<2x1xf32>
    %181 = vector.broadcast %180 : vector<2x1xf32> to vector<2x16xf32>
    %182 = arith.mulf %181, %12 : vector<2x16xf32>
    %183 = arith.addf %179, %182 : vector<2x16xf32>
    %184 = vector.extract_strided_slice %173 {offsets = [0, 1], sizes = [2, 1], strides = [1, 1]} : vector<2x4xf32> to vector<2x1xf32>
    %185 = vector.broadcast %184 : vector<2x1xf32> to vector<2x16xf32>
    %186 = arith.mulf %185, %15 : vector<2x16xf32>
    %187 = arith.addf %183, %186 : vector<2x16xf32>
    %188 = vector.extract_strided_slice %173 {offsets = [0, 2], sizes = [2, 1], strides = [1, 1]} : vector<2x4xf32> to vector<2x1xf32>
    %189 = vector.broadcast %188 : vector<2x1xf32> to vector<2x16xf32>
    %190 = arith.mulf %189, %18 : vector<2x16xf32>
    %191 = arith.addf %187, %190 : vector<2x16xf32>
    %192 = vector.extract_strided_slice %173 {offsets = [0, 3], sizes = [2, 1], strides = [1, 1]} : vector<2x4xf32> to vector<2x1xf32>
    %193 = vector.broadcast %192 : vector<2x1xf32> to vector<2x16xf32>
    %194 = arith.mulf %193, %21 : vector<2x16xf32>
    %195 = arith.addf %191, %194 : vector<2x16xf32>
    %196 = vector.extract_strided_slice %195 {offsets = [0, 0], sizes = [2, 12], strides = [1, 1]} : vector<2x16xf32> to vector<2x12xf32>
    %197 = arith.negf %196 : vector<2x12xf32>
    %198 = math.exp %197 : vector<2x12xf32>
    %cst_31 = arith.constant 1.000000e+00 : f32
    %199 = vector.broadcast %cst_31 : f32 to vector<2x12xf32>
    %200 = arith.addf %199, %198 : vector<2x12xf32>
    %201 = arith.divf %199, %200 : vector<2x12xf32>
    %202 = vector.extract_strided_slice %195 {offsets = [0, 12], sizes = [2, 4], strides = [1, 1]} : vector<2x16xf32> to vector<2x4xf32>
    %203 = math.tanh %202 : vector<2x4xf32>
    %204 = vector.extract_strided_slice %201 {offsets = [0, 0], sizes = [2, 4], strides = [1, 1]} : vector<2x12xf32> to vector<2x4xf32>
    %205 = vector.extract_strided_slice %201 {offsets = [0, 4], sizes = [2, 4], strides = [1, 1]} : vector<2x12xf32> to vector<2x4xf32>
    %206 = vector.extract_strided_slice %201 {offsets = [0, 8], sizes = [2, 4], strides = [1, 1]} : vector<2x12xf32> to vector<2x4xf32>
    %207 = arith.mulf %205, %171 : vector<2x4xf32>
    %208 = arith.mulf %204, %203 : vector<2x4xf32>
    %209 = arith.addf %207, %208 : vector<2x4xf32>
    %210 = math.tanh %209 : vector<2x4xf32>
    %211 = arith.mulf %206, %210 : vector<2x4xf32>
    %212 = vector.shape_cast %211 : vector<2x4xf32> to vector<2x4x1xf32>
    %c0_32 = arith.constant 0 : index
    %c0_33 = arith.constant 0 : index
    %c4_34 = arith.constant 4 : index
    %213 = vector.load %arg11[%c0_32, %c0_33, %c4_34] : memref<2x4x8xf32, #tpu.memory_space<vmem>>, vector<2x4x1xf32>
    tpu.vector_store %arg11[%c0_32, %c0_33, %c4_34], %212 {strides = array<i32>} : memref<2x4x8xf32, #tpu.memory_space<vmem>>, vector<2x4x1xf32>,
    %c0_35 = arith.constant 0 : index
    %c5 = arith.constant 5 : index
    %214 = vector.load %arg2[%c0_35, %c5] : memref<2x8xf32, #tpu.memory_space<vmem>>, vector<2x1xf32>
    %215 = vector.broadcast %214 : vector<2x1xf32> to vector<2x16xf32>
    %216 = arith.mulf %215, %5 : vector<2x16xf32>
    %217 = arith.addf %216, %8 : vector<2x16xf32>
    %218 = vector.extract_strided_slice %211 {offsets = [0, 0], sizes = [2, 1], strides = [1, 1]} : vector<2x4xf32> to vector<2x1xf32>
    %219 = vector.broadcast %218 : vector<2x1xf32> to vector<2x16xf32>
    %220 = arith.mulf %219, %12 : vector<2x16xf32>
    %221 = arith.addf %217, %220 : vector<2x16xf32>
    %222 = vector.extract_strided_slice %211 {offsets = [0, 1], sizes = [2, 1], strides = [1, 1]} : vector<2x4xf32> to vector<2x1xf32>
    %223 = vector.broadcast %222 : vector<2x1xf32> to vector<2x16xf32>
    %224 = arith.mulf %223, %15 : vector<2x16xf32>
    %225 = arith.addf %221, %224 : vector<2x16xf32>
    %226 = vector.extract_strided_slice %211 {offsets = [0, 2], sizes = [2, 1], strides = [1, 1]} : vector<2x4xf32> to vector<2x1xf32>
    %227 = vector.broadcast %226 : vector<2x1xf32> to vector<2x16xf32>
    %228 = arith.mulf %227, %18 : vector<2x16xf32>
    %229 = arith.addf %225, %228 : vector<2x16xf32>
    %230 = vector.extract_strided_slice %211 {offsets = [0, 3], sizes = [2, 1], strides = [1, 1]} : vector<2x4xf32> to vector<2x1xf32>
    %231 = vector.broadcast %230 : vector<2x1xf32> to vector<2x16xf32>
    %232 = arith.mulf %231, %21 : vector<2x16xf32>
    %233 = arith.addf %229, %232 : vector<2x16xf32>
    %234 = vector.extract_strided_slice %233 {offsets = [0, 0], sizes = [2, 12], strides = [1, 1]} : vector<2x16xf32> to vector<2x12xf32>
    %235 = arith.negf %234 : vector<2x12xf32>
    %236 = math.exp %235 : vector<2x12xf32>
    %cst_36 = arith.constant 1.000000e+00 : f32
    %237 = vector.broadcast %cst_36 : f32 to vector<2x12xf32>
    %238 = arith.addf %237, %236 : vector<2x12xf32>
    %239 = arith.divf %237, %238 : vector<2x12xf32>
    %240 = vector.extract_strided_slice %233 {offsets = [0, 12], sizes = [2, 4], strides = [1, 1]} : vector<2x16xf32> to vector<2x4xf32>
    %241 = math.tanh %240 : vector<2x4xf32>
    %242 = vector.extract_strided_slice %239 {offsets = [0, 0], sizes = [2, 4], strides = [1, 1]} : vector<2x12xf32> to vector<2x4xf32>
    %243 = vector.extract_strided_slice %239 {offsets = [0, 4], sizes = [2, 4], strides = [1, 1]} : vector<2x12xf32> to vector<2x4xf32>
    %244 = vector.extract_strided_slice %239 {offsets = [0, 8], sizes = [2, 4], strides = [1, 1]} : vector<2x12xf32> to vector<2x4xf32>
    %245 = arith.mulf %243, %209 : vector<2x4xf32>
    %246 = arith.mulf %242, %241 : vector<2x4xf32>
    %247 = arith.addf %245, %246 : vector<2x4xf32>
    %248 = math.tanh %247 : vector<2x4xf32>
    %249 = arith.mulf %244, %248 : vector<2x4xf32>
    %250 = vector.shape_cast %249 : vector<2x4xf32> to vector<2x4x1xf32>
    %c0_37 = arith.constant 0 : index
    %c0_38 = arith.constant 0 : index
    %c5_39 = arith.constant 5 : index
    %251 = vector.load %arg11[%c0_37, %c0_38, %c5_39] : memref<2x4x8xf32, #tpu.memory_space<vmem>>, vector<2x4x1xf32>
    tpu.vector_store %arg11[%c0_37, %c0_38, %c5_39], %250 {strides = array<i32>} : memref<2x4x8xf32, #tpu.memory_space<vmem>>, vector<2x4x1xf32>,
    %c0_40 = arith.constant 0 : index
    %c6 = arith.constant 6 : index
    %252 = vector.load %arg2[%c0_40, %c6] : memref<2x8xf32, #tpu.memory_space<vmem>>, vector<2x1xf32>
    %253 = vector.broadcast %252 : vector<2x1xf32> to vector<2x16xf32>
    %254 = arith.mulf %253, %5 : vector<2x16xf32>
    %255 = arith.addf %254, %8 : vector<2x16xf32>
    %256 = vector.extract_strided_slice %249 {offsets = [0, 0], sizes = [2, 1], strides = [1, 1]} : vector<2x4xf32> to vector<2x1xf32>
    %257 = vector.broadcast %256 : vector<2x1xf32> to vector<2x16xf32>
    %258 = arith.mulf %257, %12 : vector<2x16xf32>
    %259 = arith.addf %255, %258 : vector<2x16xf32>
    %260 = vector.extract_strided_slice %249 {offsets = [0, 1], sizes = [2, 1], strides = [1, 1]} : vector<2x4xf32> to vector<2x1xf32>
    %261 = vector.broadcast %260 : vector<2x1xf32> to vector<2x16xf32>
    %262 = arith.mulf %261, %15 : vector<2x16xf32>
    %263 = arith.addf %259, %262 : vector<2x16xf32>
    %264 = vector.extract_strided_slice %249 {offsets = [0, 2], sizes = [2, 1], strides = [1, 1]} : vector<2x4xf32> to vector<2x1xf32>
    %265 = vector.broadcast %264 : vector<2x1xf32> to vector<2x16xf32>
    %266 = arith.mulf %265, %18 : vector<2x16xf32>
    %267 = arith.addf %263, %266 : vector<2x16xf32>
    %268 = vector.extract_strided_slice %249 {offsets = [0, 3], sizes = [2, 1], strides = [1, 1]} : vector<2x4xf32> to vector<2x1xf32>
    %269 = vector.broadcast %268 : vector<2x1xf32> to vector<2x16xf32>
    %270 = arith.mulf %269, %21 : vector<2x16xf32>
    %271 = arith.addf %267, %270 : vector<2x16xf32>
    %272 = vector.extract_strided_slice %271 {offsets = [0, 0], sizes = [2, 12], strides = [1, 1]} : vector<2x16xf32> to vector<2x12xf32>
    %273 = arith.negf %272 : vector<2x12xf32>
    %274 = math.exp %273 : vector<2x12xf32>
    %cst_41 = arith.constant 1.000000e+00 : f32
    %275 = vector.broadcast %cst_41 : f32 to vector<2x12xf32>
    %276 = arith.addf %275, %274 : vector<2x12xf32>
    %277 = arith.divf %275, %276 : vector<2x12xf32>
    %278 = vector.extract_strided_slice %271 {offsets = [0, 12], sizes = [2, 4], strides = [1, 1]} : vector<2x16xf32> to vector<2x4xf32>
    %279 = math.tanh %278 : vector<2x4xf32>
    %280 = vector.extract_strided_slice %277 {offsets = [0, 0], sizes = [2, 4], strides = [1, 1]} : vector<2x12xf32> to vector<2x4xf32>
    %281 = vector.extract_strided_slice %277 {offsets = [0, 4], sizes = [2, 4], strides = [1, 1]} : vector<2x12xf32> to vector<2x4xf32>
    %282 = vector.extract_strided_slice %277 {offsets = [0, 8], sizes = [2, 4], strides = [1, 1]} : vector<2x12xf32> to vector<2x4xf32>
    %283 = arith.mulf %281, %247 : vector<2x4xf32>
    %284 = arith.mulf %280, %279 : vector<2x4xf32>
    %285 = arith.addf %283, %284 : vector<2x4xf32>
    %286 = math.tanh %285 : vector<2x4xf32>
    %287 = arith.mulf %282, %286 : vector<2x4xf32>
    %288 = vector.shape_cast %287 : vector<2x4xf32> to vector<2x4x1xf32>
    %c0_42 = arith.constant 0 : index
    %c0_43 = arith.constant 0 : index
    %c6_44 = arith.constant 6 : index
    %289 = vector.load %arg11[%c0_42, %c0_43, %c6_44] : memref<2x4x8xf32, #tpu.memory_space<vmem>>, vector<2x4x1xf32>
    tpu.vector_store %arg11[%c0_42, %c0_43, %c6_44], %288 {strides = array<i32>} : memref<2x4x8xf32, #tpu.memory_space<vmem>>, vector<2x4x1xf32>,
    %c0_45 = arith.constant 0 : index
    %c7 = arith.constant 7 : index
    %290 = vector.load %arg2[%c0_45, %c7] : memref<2x8xf32, #tpu.memory_space<vmem>>, vector<2x1xf32>
    %291 = vector.broadcast %290 : vector<2x1xf32> to vector<2x16xf32>
    %292 = arith.mulf %291, %5 : vector<2x16xf32>
    %293 = arith.addf %292, %8 : vector<2x16xf32>
    %294 = vector.extract_strided_slice %287 {offsets = [0, 0], sizes = [2, 1], strides = [1, 1]} : vector<2x4xf32> to vector<2x1xf32>
    %295 = vector.broadcast %294 : vector<2x1xf32> to vector<2x16xf32>
    %296 = arith.mulf %295, %12 : vector<2x16xf32>
    %297 = arith.addf %293, %296 : vector<2x16xf32>
    %298 = vector.extract_strided_slice %287 {offsets = [0, 1], sizes = [2, 1], strides = [1, 1]} : vector<2x4xf32> to vector<2x1xf32>
    %299 = vector.broadcast %298 : vector<2x1xf32> to vector<2x16xf32>
    %300 = arith.mulf %299, %15 : vector<2x16xf32>
    %301 = arith.addf %297, %300 : vector<2x16xf32>
    %302 = vector.extract_strided_slice %287 {offsets = [0, 2], sizes = [2, 1], strides = [1, 1]} : vector<2x4xf32> to vector<2x1xf32>
    %303 = vector.broadcast %302 : vector<2x1xf32> to vector<2x16xf32>
    %304 = arith.mulf %303, %18 : vector<2x16xf32>
    %305 = arith.addf %301, %304 : vector<2x16xf32>
    %306 = vector.extract_strided_slice %287 {offsets = [0, 3], sizes = [2, 1], strides = [1, 1]} : vector<2x4xf32> to vector<2x1xf32>
    %307 = vector.broadcast %306 : vector<2x1xf32> to vector<2x16xf32>
    %308 = arith.mulf %307, %21 : vector<2x16xf32>
    %309 = arith.addf %305, %308 : vector<2x16xf32>
    %310 = vector.extract_strided_slice %309 {offsets = [0, 0], sizes = [2, 12], strides = [1, 1]} : vector<2x16xf32> to vector<2x12xf32>
    %311 = arith.negf %310 : vector<2x12xf32>
    %312 = math.exp %311 : vector<2x12xf32>
    %cst_46 = arith.constant 1.000000e+00 : f32
    %313 = vector.broadcast %cst_46 : f32 to vector<2x12xf32>
    %314 = arith.addf %313, %312 : vector<2x12xf32>
    %315 = arith.divf %313, %314 : vector<2x12xf32>
    %316 = vector.extract_strided_slice %309 {offsets = [0, 12], sizes = [2, 4], strides = [1, 1]} : vector<2x16xf32> to vector<2x4xf32>
    %317 = math.tanh %316 : vector<2x4xf32>
    %318 = vector.extract_strided_slice %315 {offsets = [0, 0], sizes = [2, 4], strides = [1, 1]} : vector<2x12xf32> to vector<2x4xf32>
    %319 = vector.extract_strided_slice %315 {offsets = [0, 4], sizes = [2, 4], strides = [1, 1]} : vector<2x12xf32> to vector<2x4xf32>
    %320 = vector.extract_strided_slice %315 {offsets = [0, 8], sizes = [2, 4], strides = [1, 1]} : vector<2x12xf32> to vector<2x4xf32>
    %321 = arith.mulf %319, %285 : vector<2x4xf32>
    %322 = arith.mulf %318, %317 : vector<2x4xf32>
    %323 = arith.addf %321, %322 : vector<2x4xf32>
    %324 = math.tanh %323 : vector<2x4xf32>
    %325 = arith.mulf %320, %324 : vector<2x4xf32>
    %326 = vector.shape_cast %325 : vector<2x4xf32> to vector<2x4x1xf32>
    %c0_47 = arith.constant 0 : index
    %c0_48 = arith.constant 0 : index
    %c7_49 = arith.constant 7 : index
    %327 = vector.load %arg11[%c0_47, %c0_48, %c7_49] : memref<2x4x8xf32, #tpu.memory_space<vmem>>, vector<2x4x1xf32>
    tpu.vector_store %arg11[%c0_47, %c0_48, %c7_49], %326 {strides = array<i32>} : memref<2x4x8xf32, #tpu.memory_space<vmem>>, vector<2x4x1xf32>,
    %c0_50 = arith.constant 0 : index
    %c0_51 = arith.constant 0 : index
    %328 = vector.load %arg9[%c0_50, %c0_51] : memref<2x4xf32, #tpu.memory_space<vmem>>, vector<2x4xf32>
    tpu.vector_store %arg9[%c0_50, %c0_51], %325 {strides = array<i32>} : memref<2x4xf32, #tpu.memory_space<vmem>>, vector<2x4xf32>,
    %c0_52 = arith.constant 0 : index
    %c0_53 = arith.constant 0 : index
    %329 = vector.load %arg10[%c0_52, %c0_53] : memref<2x4xf32, #tpu.memory_space<vmem>>, vector<2x4xf32>
    tpu.vector_store %arg10[%c0_52, %c0_53], %323 {strides = array<i32>} : memref<2x4xf32, #tpu.memory_space<vmem>>, vector<2x4xf32>,
    %c0_54 = arith.constant 0 : index
    %c0_55 = arith.constant 0 : index
    %c0_56 = arith.constant 0 : index
    %330 = vector.load %arg6[%c0_54, %c0_55, %c0_56] : memref<1x5x4xf32, #tpu.memory_space<vmem>>, vector<1x5x4xf32>
    %c0_57 = arith.constant 0 : index
    %c0_58 = arith.constant 0 : index
    %c0_59 = arith.constant 0 : index
    %331 = vector.load %arg7[%c0_57, %c0_58, %c0_59] : memref<1x5x1xf32, #tpu.memory_space<vmem>>, vector<1x5x1xf32>
    %332 = vector.shape_cast %331 : vector<1x5x1xf32> to vector<1x5x1xf32>
    %333 = vector.broadcast %332 : vector<1x5x1xf32> to vector<2x5x8xf32>
    %334 = vector.extract_strided_slice %330 {offsets = [0, 0, 0], sizes = [1, 5, 1], strides = [1, 1, 1]} : vector<1x5x4xf32> to vector<1x5x1xf32>
    %c0_60 = arith.constant 0 : index
    %c0_61 = arith.constant 0 : index
    %c0_62 = arith.constant 0 : index
    %335 = vector.load %arg11[%c0_60, %c0_61, %c0_62] : memref<2x4x8xf32, #tpu.memory_space<vmem>>, vector<2x1x8xf32>
    %336 = vector.broadcast %334 : vector<1x5x1xf32> to vector<2x5x8xf32>
    %337 = vector.broadcast %335 : vector<2x1x8xf32> to vector<2x5x8xf32>
    %338 = arith.mulf %336, %337 : vector<2x5x8xf32>
    %339 = arith.addf %333, %338 : vector<2x5x8xf32>
    %340 = vector.extract_strided_slice %330 {offsets = [0, 0, 1], sizes = [1, 5, 1], strides = [1, 1, 1]} : vector<1x5x4xf32> to vector<1x5x1xf32>
    %c0_63 = arith.constant 0 : index
    %c1_64 = arith.constant 1 : index
    %c0_65 = arith.constant 0 : index
    %341 = vector.load %arg11[%c0_63, %c1_64, %c0_65] : memref<2x4x8xf32, #tpu.memory_space<vmem>>, vector<2x1x8xf32>
    %342 = vector.broadcast %340 : vector<1x5x1xf32> to vector<2x5x8xf32>
    %343 = vector.broadcast %341 : vector<2x1x8xf32> to vector<2x5x8xf32>
    %344 = arith.mulf %342, %343 : vector<2x5x8xf32>
    %345 = arith.addf %339, %344 : vector<2x5x8xf32>
    %346 = vector.extract_strided_slice %330 {offsets = [0, 0, 2], sizes = [1, 5, 1], strides = [1, 1, 1]} : vector<1x5x4xf32> to vector<1x5x1xf32>
    %c0_66 = arith.constant 0 : index
    %c2_67 = arith.constant 2 : index
    %c0_68 = arith.constant 0 : index
    %347 = vector.load %arg11[%c0_66, %c2_67, %c0_68] : memref<2x4x8xf32, #tpu.memory_space<vmem>>, vector<2x1x8xf32>
    %348 = vector.broadcast %346 : vector<1x5x1xf32> to vector<2x5x8xf32>
    %349 = vector.broadcast %347 : vector<2x1x8xf32> to vector<2x5x8xf32>
    %350 = arith.mulf %348, %349 : vector<2x5x8xf32>
    %351 = arith.addf %345, %350 : vector<2x5x8xf32>
    %352 = vector.extract_strided_slice %330 {offsets = [0, 0, 3], sizes = [1, 5, 1], strides = [1, 1, 1]} : vector<1x5x4xf32> to vector<1x5x1xf32>
    %c0_69 = arith.constant 0 : index
    %c3_70 = arith.constant 3 : index
    %c0_71 = arith.constant 0 : index
    %353 = vector.load %arg11[%c0_69, %c3_70, %c0_71] : memref<2x4x8xf32, #tpu.memory_space<vmem>>, vector<2x1x8xf32>
    %354 = vector.broadcast %352 : vector<1x5x1xf32> to vector<2x5x8xf32>
    %355 = vector.broadcast %353 : vector<2x1x8xf32> to vector<2x5x8xf32>
    %356 = arith.mulf %354, %355 : vector<2x5x8xf32>
    %357 = arith.addf %351, %356 : vector<2x5x8xf32>
    %c0_72 = arith.constant 0 : index
    %c0_73 = arith.constant 0 : index
    %c0_74 = arith.constant 0 : index
    %358 = vector.load %arg8[%c0_72, %c0_73, %c0_74] : memref<2x5x8xf32, #tpu.memory_space<vmem>>, vector<2x5x8xf32>
    tpu.vector_store %arg8[%c0_72, %c0_73, %c0_74], %357 {strides = array<i32>} : memref<2x5x8xf32, #tpu.memory_space<vmem>>, vector<2x5x8xf32>,
    return
  }
  func.func @transform_0(%arg0: i32, %arg1: i32) -> (i32, i32) {
    %c0_i32 = arith.constant 0 : i32
    return %arg0, %arg1 : i32, i32
  }
  func.func @transform_1(%arg0: i32, %arg1: i32) -> (i32, i32) {
    %c0_i32 = arith.constant 0 : i32
    %c0_i32_0 = arith.constant 0 : i32
    %c0_i32_1 = arith.constant 0 : i32
    return %c0_i32, %c0_i32_0 : i32, i32
  }
  func.func @transform_2(%arg0: i32, %arg1: i32) -> (i32, i32) {
    %c0_i32 = arith.constant 0 : i32
    %c0_i32_0 = arith.constant 0 : i32
    %c0_i32_1 = arith.constant 0 : i32
    return %c0_i32, %c0_i32_0 : i32, i32
  }
  func.func @transform_3(%arg0: i32, %arg1: i32) -> (i32, i32) {
    %c0_i32 = arith.constant 0 : i32
    %c0_i32_0 = arith.constant 0 : i32
    %c0_i32_1 = arith.constant 0 : i32
    return %c0_i32, %c0_i32_0 : i32, i32
  }
  func.func @transform_4(%arg0: i32, %arg1: i32) -> (i32, i32, i32) {
    %c0_i32 = arith.constant 0 : i32
    %c0_i32_0 = arith.constant 0 : i32
    %c0_i32_1 = arith.constant 0 : i32
    %c0_i32_2 = arith.constant 0 : i32
    return %c0_i32, %c0_i32_0, %c0_i32_1 : i32, i32, i32
  }
  func.func @transform_5(%arg0: i32, %arg1: i32) -> (i32, i32, i32) {
    %c0_i32 = arith.constant 0 : i32
    %c0_i32_0 = arith.constant 0 : i32
    %c0_i32_1 = arith.constant 0 : i32
    %c0_i32_2 = arith.constant 0 : i32
    return %c0_i32, %c0_i32_0, %c0_i32_1 : i32, i32, i32
  }
  func.func @transform_6(%arg0: i32, %arg1: i32) -> (i32, i32, i32) {
    %c0_i32 = arith.constant 0 : i32
    %c0_i32_0 = arith.constant 0 : i32
    return %arg0, %c0_i32, %arg1 : i32, i32, i32
  }
}

</mosaic_0001>

<bundles_post_ra>
// kernel: tpu_custom_call.1
= control target key start
LH: loop header
LB: loop body
LE: loop exit
PB: predicated region body
PF: predicated region fallthrough
CT: control target
= control target key end

     0   :  { %vm27_vm0 = vcmask 25600   ;;  %v966_v0 = vmov 0   ;;  %v967_v2 = vmov 1   ;;  %v968_v3 = vmov 0.0   ;;  %s971_s23 = smov 4   ;;  %s982_s21 = smov 124   ;;  %s1267_s0 = inlined_call_operand.vmem [shape: f32[2,8], index: 0, kind: input, shape index: {}]   ;;  %s1268_s1 = inlined_call_operand.vmem [shape: f32[1,16], index: 1, kind: input, shape index: {}]   ;;  %s1269_s2 = inlined_call_operand.vmem [shape: f32[1,16], index: 2, kind: input, shape index: {}]   ;;  %s1270_s3 = inlined_call_operand.vmem [shape: f32[4,16], index: 3, kind: input, shape index: {}]   ;;  %s1271_s4 = inlined_call_operand.vmem [shape: f32[1,5,4], index: 4, kind: input, shape index: {}]   ;;  %s1272_s5 = inlined_call_operand.vmem [shape: f32[1,5,1], index: 5, kind: input, shape index: {}]   ;;  %s1273_s6 = inlined_call_operand.vmem [shape: f32[2,5,8], index: 6, kind: output, shape index: {}]  }
   0x1   :  { %844 = vset.pattern.permute.xlu0 %v966_v0  ;;  %v45_v1 = vld [vmem:[%s1267_s0] sm:$0x3]  ;;  %845 = vset.pattern.permute.xlu1 %v967_v2  ;;  %28 = vst.msk [vmem:[#allocation2] sm:$0x3] %vm27_vm0, %v968_v3  ;;  %v969_v4 = vmov 3   ;;  %v970_v7 = vmov 2  }
   0x2   :  { %48 = vperm.xlu0 %844, %v45_v1   ;;  %29 = vst.msk [vmem:[#allocation3] sm:$0x3] %vm27_vm0, %v968_v3  ;;  %847 = vset.pattern.permute.xlu2 %v969_v4  ;;  %v38_v9 = vld [vmem:[%s1270_s3] sm:$0xf]  ;;  %v973_v52 = vmov 9   ;;  %v974_v53 = vmov 8  }
   0x3   :  { %v1035_v10 = vld [vmem:[%s1268_s1] ss:$0 sm:$0xff]  ;;  %v1037_v11 = vperm.slane %v38_v9, 0  ;;  %v1047_v18 = vperm.slane %v38_v9, 1  ;;  %v1049_v20 = vperm.slane %v38_v9, 2  ;;  %v1051_v21 = vperm.slane %v38_v9, 3 }
   0x4   :  { %v1042_v12 = vld [vmem:[%s1269_s2] ss:$0 sm:$0xff]  ;;  %s972_s1 = smov 116   ;;  %v975_v56 = vmov 11   ;;  %v976_v57 = vmov 10  }
   0x5   :  { %v136_v51 = vld [vmem:[%s1267_s0] sm:$0x3] }
   0x8   :  { %v43_v5 = vld [vmem:[#allocation2] sm:$0x3] }
   0x9   :  { %61 = vperm.xlu1 %845, %v43_v5   ;;  %73 = vperm.xlu2 %847, %v43_v5   ;;  %v44_v6 = vld [vmem:[#allocation3] sm:$0x3] }
   0xa   :  { %55 = vperm.xlu0 %844, %v43_v5  }
  0x11   :  { %846 = vset.pattern.permute.xlu1 %v970_v7  ;;  %850 = vset.pattern.permute.xlu2 %v973_v52 }
  0x12   :  { %67 = vperm.xlu1 %846, %v43_v5   ;;  %99 = vrot.lane.b32.xlu0 %v44_v6, %s971_s23 }
  0x13   :  { %848 = vset.pattern.permute.xlu0 %v967_v2 }
  0x1a   :  { %139 = vperm.xlu0 %848, %v136_v51   ;;  %849 = vset.pattern.permute.xlu1 %v974_v53 }
  0x22   :  { %853 = vset.pattern.permute.xlu0 %v970_v7 }
  0x63   :  { %v74_v22 = vpop.permute.xlu2 %73 }
  0x64   :  { %v76_v27 = vmul.f32 %v74_v22, %v1051_v21 }
  0x74   :  { %v49_v8 = vpop.permute.xlu0 %48 }
  0x75   :  { %v51_v13 = vmul.f32 %v1035_v10, %v49_v8 }
  0x77   :  { %v52_v17 = vadd.f32 %v1042_v12, %v51_v13 }
  0x7b   :  { %v62_v14 = vpop.permute.xlu1 %61 }
  0x7c   :  { %v56_v15 = vpop.permute.xlu0 %55  ;;  %v64_v23 = vmul.f32 %v62_v14, %v1047_v18 }
  0x7d   :  { %v58_v16 = vmul.f32 %v56_v15, %v1037_v11 }
  0x7f   :  { %v59_v19 = vadd.f32 %v58_v16, %v52_v17 }
  0x81   :  { %v65_v25 = vadd.f32 %v64_v23, %v59_v19 }
  0x84   :  { %v68_v24 = vpop.permute.xlu1 %67  ;;  %v100_v46 = vpop.permute.xlu0 %99 }
  0x85   :  { %v70_v26 = vmul.f32 %v68_v24, %v1049_v20 }
  0x87   :  { %v71_v28 = vadd.f32 %v70_v26, %v65_v25 }
  0x89   :  { %v77_v29 = vadd.f32 %v76_v27, %v71_v28 }
  0x8b   :  { %902 = vtanh.f32 %v77_v29  ;;  %v819_v31 = vmul.f32 -1.442695, %v77_v29 }
  0x8c   :  { %v140_v58 = vpop.permute.xlu0 %139 }
  0x8d   :  { %904 = vpow2.f32 %v819_v31  ;;  %v142_v59 = vmul.f32 %v1035_v10, %v140_v58 }
  0x8f   :  { %v143_v62 = vadd.f32 %v1042_v12, %v142_v59 }
  0x91   :  { %v903_v30 = vpop.eup %902 }
  0x92   :  { %104 = vrot.lane.b32.xlu2 %v903_v30, %s972_s1 }
  0x93   :  { %v905_v32 = vpop.eup %904 }
  0x94   :  { %v81_v33 = vadd.f32 1.0, %v905_v32 }
  0x96   :  { %906 = vrcp.f32 %v81_v33  ;;  %v93_v39 = vand.u32 2147483648, %v81_v33  ;;  %vm87_vm2 = vweird.f32 %v81_v33  ;;  %v91_v40 = vand.u32 2147483647, %v81_v33 }
  0x98   :  { %v94_v42 = vor.u32 1.1754944e-38, %v93_v39  ;;  %vm92_vm4 = vcmp.eq.f32.partialorder %v91_v40, 8.507059e+37  ;;  %v223_v39 = vld [vmem:[%s1267_s0] sm:$0x3] }
  0x9c   :  { %v907_v34 = vpop.eup %906 }
  0x9d   :  { %v83_v35 = vmul.f32 %v907_v34, %v81_v33  ;;  %vm88_vm1 = vweird.f32 %v907_v34 }
  0x9e   :  { %vm89_vm3 = vmor %vm87_vm2, %vm88_vm1 }
  0x9f   :  { %v84_v36 = vsub.f32 1.0, %v83_v35 }
  0xa1   :  { %v85_v37 = vmul.f32 %v907_v34, %v84_v36 }
  0xa3   :  { %v86_v38 = vadd.f32 %v907_v34, %v85_v37 }
  0xa5   :  { %v90_v41 = vsel %vm89_vm3, %v907_v34, %v86_v38 }
  0xa6   :  { %v95_v43 = vsel %vm92_vm4, %v94_v42, %v90_v41 }
  0xa7   :  { %v102_v47 = vmul.f32 %v100_v46, %v95_v43 }
  0xec   :  { %v105_v44 = vpop.permute.xlu2 %104 }
  0xed   :  { %v107_v45 = vmul.f32 %v105_v44, %v95_v43 }
  0xef   :  { %109 = vrot.lane.b32.xlu1 %v107_v45, %s971_s23 }
 0x161   :  { %v110_v48 = vpop.permute.xlu1 %109 }
 0x162   :  { %v1058_v49 = vadd.f32 %v110_v48, %v102_v47 }
 0x164   :  { %908 = vtanh.f32 %v1058_v49 }
 0x16a   :  { %v909_v50 = vpop.eup %908 }
 0x16b   :  { %115 = vrot.lane.b32.xlu2 %v909_v50, %s971_s23 }
 0x1c5   :  { %v116_v54 = vpop.permute.xlu2 %115 }
 0x1c6   :  { %v1068_v55 = vmul.f32 %v116_v54, %v95_v43 }
 0x1c8   :  { %152 = vperm.xlu2 %850, %v1068_v55   ;;  %146 = vperm.xlu1 %849, %v1068_v55  }
 0x1d0   :  { %852 = vset.pattern.permute.xlu2 %v975_v56  ;;  %851 = vset.pattern.permute.xlu1 %v976_v57 }
 0x1d1   :  { %164 = vperm.xlu2 %852, %v1068_v55   ;;  %158 = vperm.xlu1 %851, %v1068_v55  }
 0x1d9   :  { %855 = vset.pattern.permute.xlu2 %v973_v52  ;;  %854 = vset.pattern.permute.xlu1 %v974_v53 }
 0x222   :  { %v153_v60 = vpop.permute.xlu2 %152 }
 0x223   :  { %v155_v3 = vmul.f32 %v153_v60, %v1047_v18 }
 0x22b   :  { %v165_v5 = vpop.permute.xlu2 %164 }
 0x22c   :  { %v167_v13 = vmul.f32 %v165_v5, %v1051_v21 }
 0x23a   :  { %v147_v61 = vpop.permute.xlu1 %146 }
 0x23b   :  { %v149_v63 = vmul.f32 %v147_v61, %v1037_v11 }
 0x23d   :  { %v150_v1 = vadd.f32 %v149_v63, %v143_v62 }
 0x23f   :  { %v156_v8 = vadd.f32 %v155_v3, %v150_v1 }
 0x243   :  { %v159_v6 = vpop.permute.xlu1 %158 }
 0x244   :  { %v161_v9 = vmul.f32 %v159_v6, %v1049_v20 }
 0x246   :  { %v162_v14 = vadd.f32 %v161_v9, %v156_v8 }
 0x248   :  { %v168_v15 = vadd.f32 %v167_v13, %v162_v14 }
 0x24a   :  { %910 = vtanh.f32 %v168_v15  ;;  %v820_v17 = vmul.f32 -1.442695, %v168_v15 }
 0x24c   :  { %912 = vpow2.f32 %v820_v17 }
 0x250   :  { %v911_v16 = vpop.eup %910 }
 0x251   :  { %191 = vrot.lane.b32.xlu0 %v911_v16, %s972_s1 }
 0x252   :  { %v913_v19 = vpop.eup %912 }
 0x253   :  { %v172_v22 = vadd.f32 1.0, %v913_v19 }
 0x255   :  { %914 = vrcp.f32 %v172_v22  ;;  %v184_v28 = vand.u32 2147483648, %v172_v22  ;;  %vm178_vm6 = vweird.f32 %v172_v22  ;;  %v182_v29 = vand.u32 2147483647, %v172_v22 }
 0x257   :  { %v185_v31 = vor.u32 1.1754944e-38, %v184_v28  ;;  %vm183_vm8 = vcmp.eq.f32.partialorder %v182_v29, 8.507059e+37  ;;  %v310_v28 = vld [vmem:[%s1267_s0] sm:$0x3] }
 0x259   :  { %226 = vperm.xlu0 %853, %v223_v39  }
 0x25b   :  { %v915_v23 = vpop.eup %914 }
 0x25c   :  { %v174_v24 = vmul.f32 %v915_v23, %v172_v22  ;;  %vm179_vm5 = vweird.f32 %v915_v23 }
 0x25d   :  { %vm180_vm7 = vmor %vm178_vm6, %vm179_vm5 }
 0x25e   :  { %v175_v25 = vsub.f32 1.0, %v174_v24 }
 0x260   :  { %v176_v26 = vmul.f32 %v915_v23, %v175_v25 }
 0x261   :  { %858 = vset.pattern.permute.xlu0 %v969_v4 }
 0x262   :  { %v177_v27 = vadd.f32 %v915_v23, %v176_v26 }
 0x264   :  { %v181_v30 = vsel %vm180_vm7, %v915_v23, %v177_v27 }
 0x265   :  { %v186_v33 = vsel %vm183_vm8, %v185_v31, %v181_v30 }
 0x266   :  { %v189_v35 = vmul.f32 %v186_v33, %v1058_v49 }
 0x2c3   :  { %v192_v32 = vpop.permute.xlu0 %191 }
 0x2c4   :  { %v194_v34 = vmul.f32 %v192_v32, %v186_v33 }
 0x2c6   :  { %196 = vrot.lane.b32.xlu1 %v194_v34, %s971_s23 }
 0x2cb   :  { %v227_v42 = vpop.permute.xlu0 %226 }
 0x2cc   :  { %v229_v43 = vmul.f32 %v1035_v10, %v227_v42 }
 0x2ce   :  { %v230_v46 = vadd.f32 %v1042_v12, %v229_v43 }
 0x338   :  { %v197_v36 = vpop.permute.xlu1 %196 }
 0x339   :  { %v199_v37 = vadd.f32 %v197_v36, %v189_v35 }
 0x33b   :  { %916 = vtanh.f32 %v199_v37 }
 0x341   :  { %v917_v38 = vpop.eup %916 }
 0x342   :  { %202 = vrot.lane.b32.xlu2 %v917_v38, %s971_s23 }
 0x39c   :  { %v203_v40 = vpop.permute.xlu2 %202 }
 0x39d   :  { %v1092_v41 = vmul.f32 %v203_v40, %v186_v33 }
 0x39f   :  { %239 = vperm.xlu2 %855, %v1092_v41   ;;  %233 = vperm.xlu1 %854, %v1092_v41  }
 0x3a7   :  { %857 = vset.pattern.permute.xlu2 %v975_v56  ;;  %856 = vset.pattern.permute.xlu1 %v976_v57 }
 0x3a8   :  { %251 = vperm.xlu2 %857, %v1092_v41   ;;  %245 = vperm.xlu1 %856, %v1092_v41  }
 0x3b0   :  { %860 = vset.pattern.permute.xlu2 %v973_v52  ;;  %859 = vset.pattern.permute.xlu1 %v974_v53 }
 0x3f9   :  { %v240_v44 = vpop.permute.xlu2 %239 }
 0x3fa   :  { %v242_v49 = vmul.f32 %v240_v44, %v1047_v18 }
 0x402   :  { %v252_v50 = vpop.permute.xlu2 %251 }
 0x403   :  { %v254_v59 = vmul.f32 %v252_v50, %v1051_v21 }
 0x411   :  { %v234_v45 = vpop.permute.xlu1 %233 }
 0x412   :  { %v236_v47 = vmul.f32 %v234_v45, %v1037_v11 }
 0x414   :  { %v237_v48 = vadd.f32 %v236_v47, %v230_v46 }
 0x416   :  { %v243_v54 = vadd.f32 %v242_v49, %v237_v48 }
 0x41a   :  { %v246_v51 = vpop.permute.xlu1 %245 }
 0x41b   :  { %v248_v58 = vmul.f32 %v246_v51, %v1049_v20 }
 0x41d   :  { %v249_v60 = vadd.f32 %v248_v58, %v243_v54 }
 0x41f   :  { %v255_v61 = vadd.f32 %v254_v59, %v249_v60 }
 0x421   :  { %918 = vtanh.f32 %v255_v61  ;;  %v821_v63 = vmul.f32 -1.442695, %v255_v61 }
 0x423   :  { %920 = vpow2.f32 %v821_v63 }
 0x427   :  { %v919_v62 = vpop.eup %918 }
 0x428   :  { %278 = vrot.lane.b32.xlu0 %v919_v62, %s972_s1 }
 0x429   :  { %v921_v1 = vpop.eup %920 }
 0x42a   :  { %v259_v3 = vadd.f32 1.0, %v921_v1 }
 0x42c   :  { %922 = vrcp.f32 %v259_v3  ;;  %v271_v14 = vand.u32 2147483648, %v259_v3  ;;  %vm265_vm10 = vweird.f32 %v259_v3  ;;  %v269_v15 = vand.u32 2147483647, %v259_v3 }
 0x42e   :  { %v272_v17 = vor.u32 1.1754944e-38, %v271_v14  ;;  %vm270_vm12 = vcmp.eq.f32.partialorder %v269_v15, 8.507059e+37 }
 0x430   :  { %313 = vperm.xlu0 %858, %v310_v28  }
 0x432   :  { %v923_v5 = vpop.eup %922 }
 0x433   :  { %v261_v6 = vmul.f32 %v923_v5, %v259_v3  ;;  %vm266_vm9 = vweird.f32 %v923_v5 }
 0x434   :  { %vm267_vm11 = vmor %vm265_vm10, %vm266_vm9 }
 0x435   :  { %v262_v8 = vsub.f32 1.0, %v261_v6 }
 0x437   :  { %v263_v9 = vmul.f32 %v923_v5, %v262_v8  ;;  %v977_v8 = vmov 4  }
 0x438   :  { %863 = vset.pattern.permute.xlu0 %v977_v8 }
 0x439   :  { %v264_v13 = vadd.f32 %v923_v5, %v263_v9 }
 0x43b   :  { %v268_v16 = vsel %vm267_vm11, %v923_v5, %v264_v13 }
 0x43c   :  { %v273_v22 = vsel %vm270_vm12, %v272_v17, %v268_v16  ;;  %v397_v16 = vld [vmem:[%s1267_s0] sm:$0x3] }
 0x43d   :  { %v276_v24 = vmul.f32 %v273_v22, %v199_v37 }
 0x49a   :  { %v279_v19 = vpop.permute.xlu0 %278 }
 0x49b   :  { %v281_v23 = vmul.f32 %v279_v19, %v273_v22 }
 0x49d   :  { %283 = vrot.lane.b32.xlu1 %v281_v23, %s971_s23 }
 0x4a2   :  { %v314_v31 = vpop.permute.xlu0 %313 }
 0x4a3   :  { %v316_v32 = vmul.f32 %v1035_v10, %v314_v31 }
 0x4a5   :  { %v317_v35 = vadd.f32 %v1042_v12, %v316_v32 }
 0x50f   :  { %v284_v25 = vpop.permute.xlu1 %283 }
 0x510   :  { %v286_v26 = vadd.f32 %v284_v25, %v276_v24 }
 0x512   :  { %924 = vtanh.f32 %v286_v26 }
 0x518   :  { %v925_v27 = vpop.eup %924 }
 0x519   :  { %289 = vrot.lane.b32.xlu2 %v925_v27, %s971_s23 }
 0x573   :  { %v290_v29 = vpop.permute.xlu2 %289 }
 0x574   :  { %v1114_v30 = vmul.f32 %v290_v29, %v273_v22 }
 0x576   :  { %326 = vperm.xlu2 %860, %v1114_v30   ;;  %320 = vperm.xlu1 %859, %v1114_v30  }
 0x57e   :  { %862 = vset.pattern.permute.xlu2 %v975_v56  ;;  %861 = vset.pattern.permute.xlu1 %v976_v57 }
 0x57f   :  { %338 = vperm.xlu2 %862, %v1114_v30   ;;  %332 = vperm.xlu1 %861, %v1114_v30  }
 0x587   :  { %865 = vset.pattern.permute.xlu2 %v973_v52  ;;  %864 = vset.pattern.permute.xlu1 %v974_v53 }
 0x5d0   :  { %v327_v33 = vpop.permute.xlu2 %326 }
 0x5d1   :  { %v329_v38 = vmul.f32 %v327_v33, %v1047_v18 }
 0x5d9   :  { %v339_v39 = vpop.permute.xlu2 %338 }
 0x5da   :  { %v341_v44 = vmul.f32 %v339_v39, %v1051_v21 }
 0x5e8   :  { %v321_v34 = vpop.permute.xlu1 %320 }
 0x5e9   :  { %v323_v36 = vmul.f32 %v321_v34, %v1037_v11 }
 0x5eb   :  { %v324_v37 = vadd.f32 %v323_v36, %v317_v35 }
 0x5ed   :  { %v330_v42 = vadd.f32 %v329_v38, %v324_v37 }
 0x5f1   :  { %v333_v40 = vpop.permute.xlu1 %332 }
 0x5f2   :  { %v335_v43 = vmul.f32 %v333_v40, %v1049_v20 }
 0x5f4   :  { %v336_v45 = vadd.f32 %v335_v43, %v330_v42 }
 0x5f6   :  { %v342_v46 = vadd.f32 %v341_v44, %v336_v45 }
 0x5f8   :  { %926 = vtanh.f32 %v342_v46  ;;  %v822_v48 = vmul.f32 -1.442695, %v342_v46 }
 0x5fa   :  { %928 = vpow2.f32 %v822_v48 }
 0x5fe   :  { %v927_v47 = vpop.eup %926 }
 0x5ff   :  { %365 = vrot.lane.b32.xlu0 %v927_v47, %s972_s1 }
 0x600   :  { %v929_v49 = vpop.eup %928 }
 0x601   :  { %v346_v50 = vadd.f32 1.0, %v929_v49 }
 0x603   :  { %930 = vrcp.f32 %v346_v50  ;;  %v358_v61 = vand.u32 2147483648, %v346_v50  ;;  %vm352_vm14 = vweird.f32 %v346_v50  ;;  %v356_v62 = vand.u32 2147483647, %v346_v50 }
 0x605   :  { %v359_v1 = vor.u32 1.1754944e-38, %v358_v61  ;;  %vm357_vm1 = vcmp.eq.f32.partialorder %v356_v62, 8.507059e+37 }
 0x607   :  { %400 = vperm.xlu0 %863, %v397_v16  }
 0x609   :  { %v931_v51 = vpop.eup %930 }
 0x60a   :  { %v348_v54 = vmul.f32 %v931_v51, %v346_v50  ;;  %vm353_vm13 = vweird.f32 %v931_v51 }
 0x60b   :  { %vm354_vm15 = vmor %vm352_vm14, %vm353_vm13  ;;  %vm133_vm14 = vcmask 3072  }
 0x60c   :  { %v349_v58 = vsub.f32 1.0, %v348_v54 }
 0x60e   :  { %v350_v59 = vmul.f32 %v931_v51, %v349_v58 }
 0x610   :  { %v351_v60 = vadd.f32 %v931_v51, %v350_v59 }
 0x612   :  { %v355_v63 = vsel %vm354_vm15, %v931_v51, %v351_v60  ;;  %v978_v60 = vmov 5  }
 0x613   :  { %v360_v5 = vsel %vm357_vm1, %v359_v1, %v355_v63  ;;  %868 = vset.pattern.permute.xlu0 %v978_v60 }
 0x614   :  { %v363_v9 = vmul.f32 %v360_v5, %v286_v26 }
 0x671   :  { %v366_v3 = vpop.permute.xlu0 %365 }
 0x672   :  { %v368_v6 = vmul.f32 %v366_v3, %v360_v5  ;;  %v484_v3 = vld [vmem:[%s1267_s0] sm:$0x3] }
 0x674   :  { %370 = vrot.lane.b32.xlu1 %v368_v6, %s971_s23 }
 0x679   :  { %v401_v22 = vpop.permute.xlu0 %400 }
 0x67a   :  { %v403_v23 = vmul.f32 %v1035_v10, %v401_v22 }
 0x67c   :  { %v404_v26 = vadd.f32 %v1042_v12, %v403_v23 }
 0x6e6   :  { %v371_v13 = vpop.permute.xlu1 %370 }
 0x6e7   :  { %v373_v14 = vadd.f32 %v371_v13, %v363_v9 }
 0x6e9   :  { %932 = vtanh.f32 %v373_v14 }
 0x6ef   :  { %v933_v15 = vpop.eup %932 }
 0x6f0   :  { %376 = vrot.lane.b32.xlu2 %v933_v15, %s971_s23 }
 0x74a   :  { %v377_v17 = vpop.permute.xlu2 %376 }
 0x74b   :  { %v1136_v19 = vmul.f32 %v377_v17, %v360_v5 }
 0x74d   :  { %413 = vperm.xlu2 %865, %v1136_v19   ;;  %407 = vperm.xlu1 %864, %v1136_v19  }
 0x755   :  { %867 = vset.pattern.permute.xlu2 %v975_v56  ;;  %866 = vset.pattern.permute.xlu1 %v976_v57 }
 0x756   :  { %425 = vperm.xlu2 %867, %v1136_v19   ;;  %419 = vperm.xlu1 %866, %v1136_v19  }
 0x75e   :  { %870 = vset.pattern.permute.xlu2 %v973_v52  ;;  %869 = vset.pattern.permute.xlu1 %v974_v53 }
 0x7a7   :  { %v414_v24 = vpop.permute.xlu2 %413 }
 0x7a8   :  { %v416_v29 = vmul.f32 %v414_v24, %v1047_v18 }
 0x7b0   :  { %v426_v31 = vpop.permute.xlu2 %425 }
 0x7b1   :  { %v428_v35 = vmul.f32 %v426_v31, %v1051_v21 }
 0x7bf   :  { %v408_v25 = vpop.permute.xlu1 %407 }
 0x7c0   :  { %v410_v27 = vmul.f32 %v408_v25, %v1037_v11 }
 0x7c2   :  { %v411_v28 = vadd.f32 %v410_v27, %v404_v26 }
 0x7c4   :  { %v417_v33 = vadd.f32 %v416_v29, %v411_v28 }
 0x7c8   :  { %v420_v32 = vpop.permute.xlu1 %419 }
 0x7c9   :  { %v422_v34 = vmul.f32 %v420_v32, %v1049_v20 }
 0x7cb   :  { %v423_v36 = vadd.f32 %v422_v34, %v417_v33 }
 0x7cd   :  { %v429_v37 = vadd.f32 %v428_v35, %v423_v36 }
 0x7cf   :  { %934 = vtanh.f32 %v429_v37  ;;  %v823_v39 = vmul.f32 -1.442695, %v429_v37 }
 0x7d1   :  { %936 = vpow2.f32 %v823_v39 }
 0x7d5   :  { %v935_v38 = vpop.eup %934 }
 0x7d6   :  { %452 = vrot.lane.b32.xlu0 %v935_v38, %s972_s1 }
 0x7d7   :  { %v937_v40 = vpop.eup %936 }
 0x7d8   :  { %v433_v42 = vadd.f32 1.0, %v937_v40 }
 0x7da   :  { %938 = vrcp.f32 %v433_v42  ;;  %v445_v48 = vand.u32 2147483648, %v433_v42  ;;  %vm439_vm3 = vweird.f32 %v433_v42  ;;  %v443_v49 = vand.u32 2147483647, %v433_v42 }
 0x7dc   :  { %v446_v51 = vor.u32 1.1754944e-38, %v445_v48  ;;  %vm444_vm5 = vcmp.eq.f32.partialorder %v443_v49, 8.507059e+37  ;;  %v979_v48 = vmov 6  }
 0x7de   :  { %487 = vperm.xlu0 %868, %v484_v3  }
 0x7e0   :  { %v939_v43 = vpop.eup %938 }
 0x7e1   :  { %v435_v44 = vmul.f32 %v939_v43, %v433_v42  ;;  %vm440_vm2 = vweird.f32 %v939_v43 }
 0x7e2   :  { %vm441_vm4 = vmor %vm439_vm3, %vm440_vm2 }
 0x7e3   :  { %v436_v45 = vsub.f32 1.0, %v435_v44 }
 0x7e5   :  { %v437_v46 = vmul.f32 %v939_v43, %v436_v45 }
 0x7e6   :  { %873 = vset.pattern.permute.xlu0 %v979_v48 }
 0x7e7   :  { %v438_v47 = vadd.f32 %v939_v43, %v437_v46 }
 0x7e9   :  { %v442_v50 = vsel %vm441_vm4, %v939_v43, %v438_v47  ;;  %vm220_vm4 = vcmask 11272  }
 0x7ea   :  { %v447_v58 = vsel %vm444_vm5, %v446_v51, %v442_v50  ;;  %vm307_vm5 = vcmask 19472  }
 0x7eb   :  { %v450_v61 = vmul.f32 %v447_v58, %v373_v14 }
 0x848   :  { %v453_v54 = vpop.permute.xlu0 %452 }
 0x849   :  { %v455_v59 = vmul.f32 %v453_v54, %v447_v58 }
 0x84b   :  { %457 = vrot.lane.b32.xlu1 %v455_v59, %s971_s23 }
 0x850   :  { %v488_v8 = vpop.permute.xlu0 %487 }
 0x851   :  { %v490_v9 = vmul.f32 %v1035_v10, %v488_v8 }
 0x853   :  { %v491_v15 = vadd.f32 %v1042_v12, %v490_v9 }
 0x8bd   :  { %v458_v62 = vpop.permute.xlu1 %457 }
 0x8be   :  { %v460_v63 = vadd.f32 %v458_v62, %v450_v61 }
 0x8c0   :  { %940 = vtanh.f32 %v460_v63 }
 0x8c6   :  { %v941_v1 = vpop.eup %940 }
 0x8c7   :  { %463 = vrot.lane.b32.xlu2 %v941_v1, %s971_s23 }
 0x921   :  { %v464_v5 = vpop.permute.xlu2 %463 }
 0x922   :  { %v1158_v6 = vmul.f32 %v464_v5, %v447_v58  ;;  %v571_v58 = vld [vmem:[%s1267_s0] sm:$0x3] }
 0x924   :  { %500 = vperm.xlu2 %870, %v1158_v6   ;;  %494 = vperm.xlu1 %869, %v1158_v6  }
 0x92c   :  { %872 = vset.pattern.permute.xlu2 %v975_v56  ;;  %871 = vset.pattern.permute.xlu1 %v976_v57 }
 0x92d   :  { %512 = vperm.xlu2 %872, %v1158_v6   ;;  %506 = vperm.xlu1 %871, %v1158_v6  }
 0x935   :  { %875 = vset.pattern.permute.xlu2 %v973_v52  ;;  %874 = vset.pattern.permute.xlu1 %v974_v53 }
 0x97e   :  { %v501_v13 = vpop.permute.xlu2 %500 }
 0x97f   :  { %v503_v22 = vmul.f32 %v501_v13, %v1047_v18 }
 0x987   :  { %v513_v23 = vpop.permute.xlu2 %512 }
 0x988   :  { %v515_v27 = vmul.f32 %v513_v23, %v1051_v21 }
 0x996   :  { %v495_v14 = vpop.permute.xlu1 %494 }
 0x997   :  { %v497_v16 = vmul.f32 %v495_v14, %v1037_v11 }
 0x999   :  { %v498_v17 = vadd.f32 %v497_v16, %v491_v15 }
 0x99b   :  { %v504_v25 = vadd.f32 %v503_v22, %v498_v17 }
 0x99f   :  { %v507_v24 = vpop.permute.xlu1 %506 }
 0x9a0   :  { %v509_v26 = vmul.f32 %v507_v24, %v1049_v20 }
 0x9a2   :  { %v510_v28 = vadd.f32 %v509_v26, %v504_v25 }
 0x9a4   :  { %v516_v29 = vadd.f32 %v515_v27, %v510_v28 }
 0x9a6   :  { %942 = vtanh.f32 %v516_v29  ;;  %v824_v32 = vmul.f32 -1.442695, %v516_v29 }
 0x9a8   :  { %944 = vpow2.f32 %v824_v32 }
 0x9ac   :  { %v943_v31 = vpop.eup %942 }
 0x9ad   :  { %539 = vrot.lane.b32.xlu0 %v943_v31, %s972_s1 }
 0x9ae   :  { %v945_v33 = vpop.eup %944 }
 0x9af   :  { %v520_v34 = vadd.f32 1.0, %v945_v33 }
 0x9b1   :  { %946 = vrcp.f32 %v520_v34  ;;  %v532_v40 = vand.u32 2147483648, %v520_v34  ;;  %vm526_vm7 = vweird.f32 %v520_v34  ;;  %v530_v42 = vand.u32 2147483647, %v520_v34 }
 0x9b3   :  { %v533_v44 = vor.u32 1.1754944e-38, %v532_v40  ;;  %vm531_vm9 = vcmp.eq.f32.partialorder %v530_v42, 8.507059e+37 }
 0x9b5   :  { %574 = vperm.xlu0 %873, %v571_v58   ;;  %v300_v58 = vperm.slane %v1114_v30, 1 }
 0x9b7   :  { %v947_v35 = vpop.eup %946 }
 0x9b8   :  { %v522_v36 = vmul.f32 %v947_v35, %v520_v34  ;;  %vm527_vm6 = vweird.f32 %v947_v35 }
 0x9b9   :  { %vm528_vm8 = vmor %vm526_vm7, %vm527_vm6  ;;  %vm394_vm6 = vcmask 27672   ;;  %vm481_vm7 = vcmask 35872  }
 0x9ba   :  { %v523_v37 = vsub.f32 1.0, %v522_v36 }
 0x9bc   :  { %v524_v38 = vmul.f32 %v947_v35, %v523_v37 }
 0x9be   :  { %v525_v39 = vadd.f32 %v947_v35, %v524_v38 }
 0x9c0   :  { %v529_v43 = vsel %vm528_vm8, %v947_v35, %v525_v39  ;;  %v980_v39 = vmov 7   ;;  %vm568_vm8 = vcmask 44072  }
 0x9c1   :  { %v534_v46 = vsel %vm531_vm9, %v533_v44, %v529_v43  ;;  %878 = vset.pattern.permute.xlu0 %v980_v39  ;;  %v293_v39 = vperm.slane %v1114_v30, 0  ;;  %v756_v30 = vld [vmem:[%s1271_s4] sm:$0x1f]  ;;  %s981_s4 = smov 120   ;;  %vm655_vm9 = vcmask 52272  }
 0x9c2   :  { %v537_v49 = vmul.f32 %v534_v46, %v460_v63 }
 0xa1f   :  { %v540_v45 = vpop.permute.xlu0 %539 }
 0xa20   :  { %v542_v47 = vmul.f32 %v540_v45, %v534_v46  ;;  %v658_v45 = vld [vmem:[%s1267_s0] sm:$0x3] }
 0xa22   :  { %544 = vrot.lane.b32.xlu1 %v542_v47, %s971_s23 }
 0xa27   :  { %v575_v61 = vpop.permute.xlu0 %574 }
 0xa28   :  { %v577_v62 = vmul.f32 %v1035_v10, %v575_v61 }
 0xa2a   :  { %v578_v3 = vadd.f32 %v1042_v12, %v577_v62 }
 0xa94   :  { %v545_v50 = vpop.permute.xlu1 %544 }
 0xa95   :  { %v547_v51 = vadd.f32 %v545_v50, %v537_v49 }
 0xa97   :  { %948 = vtanh.f32 %v547_v51 }
 0xa9d   :  { %v949_v54 = vpop.eup %948 }
 0xa9e   :  { %550 = vrot.lane.b32.xlu2 %v949_v54, %s971_s23  ;;  %v213_v54 = vperm.slane %v1092_v41, 1 }
 0xaf8   :  { %v551_v59 = vpop.permute.xlu2 %550 }
 0xaf9   :  { %v1180_v60 = vmul.f32 %v551_v59, %v534_v46  ;;  %v120_v46 = vlaneseq  ;;  %v387_v59 = vperm.slane %v1136_v19, 1 }
 0xafb   :  { %587 = vperm.xlu2 %875, %v1180_v60   ;;  %581 = vperm.xlu1 %874, %v1180_v60   ;;  %v121_v47 = vshrl.u32 %v120_v46, 7 }
 0xafd   :  { %v122_v48 = vadd.s32 8, %v121_v47 }
 0xb03   :  { %877 = vset.pattern.permute.xlu2 %v975_v56  ;;  %876 = vset.pattern.permute.xlu1 %v976_v57 }
 0xb04   :  { %599 = vperm.xlu2 %877, %v1180_v60   ;;  %593 = vperm.xlu1 %876, %v1180_v60  }
 0xb0c   :  { %880 = vset.pattern.permute.xlu2 %v973_v52  ;;  %879 = vset.pattern.permute.xlu1 %v974_v53 }
 0xb55   :  { %v588_v63 = vpop.permute.xlu2 %587 }
 0xb56   :  { %v590_v9 = vmul.f32 %v588_v63, %v1047_v18 }
 0xb5e   :  { %v600_v13 = vpop.permute.xlu2 %599 }
 0xb5f   :  { %v602_v52 = vmul.f32 %v600_v13, %v1051_v21 }
 0xb6d   :  { %v582_v1 = vpop.permute.xlu1 %581 }
 0xb6e   :  { %v584_v5 = vmul.f32 %v582_v1, %v1037_v11 }
 0xb70   :  { %v585_v8 = vadd.f32 %v584_v5, %v578_v3 }
 0xb72   :  { %v591_v15 = vadd.f32 %v590_v9, %v585_v8 }
 0xb76   :  { %v594_v14 = vpop.permute.xlu1 %593 }
 0xb77   :  { %v596_v16 = vmul.f32 %v594_v14, %v1049_v20 }
 0xb79   :  { %v597_v53 = vadd.f32 %v596_v16, %v591_v15 }
 0xb7b   :  { %v603_v17 = vadd.f32 %v602_v52, %v597_v53 }
 0xb7d   :  { %950 = vtanh.f32 %v603_v17  ;;  %v825_v23 = vmul.f32 -1.442695, %v603_v17 }
 0xb7f   :  { %952 = vpow2.f32 %v825_v23 }
 0xb83   :  { %v951_v22 = vpop.eup %950 }
 0xb84   :  { %626 = vrot.lane.b32.xlu0 %v951_v22, %s972_s1 }
 0xb85   :  { %v953_v24 = vpop.eup %952 }
 0xb86   :  { %v607_v25 = vadd.f32 1.0, %v953_v24 }
 0xb88   :  { %954 = vrcp.f32 %v607_v25  ;;  %v619_v32 = vand.u32 2147483648, %v607_v25  ;;  %vm613_vm11 = vweird.f32 %v607_v25  ;;  %v617_v33 = vand.u32 2147483647, %v607_v25 }
 0xb8a   :  { %v620_v35 = vor.u32 1.1754944e-38, %v619_v32  ;;  %vm618_vm13 = vcmp.eq.f32.partialorder %v617_v33, 8.507059e+37 }
 0xb8c   :  { %661 = vperm.xlu0 %878, %v658_v45  }
 0xb8e   :  { %v955_v26 = vpop.eup %954 }
 0xb8f   :  { %v609_v27 = vmul.f32 %v955_v26, %v607_v25  ;;  %vm614_vm10 = vweird.f32 %v955_v26 }
 0xb90   :  { %vm615_vm12 = vmor %vm613_vm11, %vm614_vm10  ;;  %vm742_vm10 = vcmask 60472   ;;  %vm812_vm11 = vcmask 61440  }
 0xb91   :  { %v610_v28 = vsub.f32 1.0, %v609_v27 }
 0xb93   :  { %v611_v29 = vmul.f32 %v955_v26, %v610_v28 }
 0xb94   :  { %884 = vset.pattern.permute.xlu0 %v122_v48 }
 0xb95   :  { %v612_v31 = vadd.f32 %v955_v26, %v611_v29 }
 0xb97   :  { %v616_v34 = vsel %vm615_vm12, %v955_v26, %v612_v31 }
 0xb98   :  { %v621_v37 = vsel %vm618_vm13, %v620_v35, %v616_v34 }
 0xb99   :  { %v624_v40 = vmul.f32 %v621_v37, %v547_v51  ;;  %v119_v51 = vperm.slane %v1068_v55, 0 }
 0xbf6   :  { %v627_v36 = vpop.permute.xlu0 %626 }
 0xbf7   :  { %v629_v38 = vmul.f32 %v627_v36, %v621_v37 }
 0xbf9   :  { %631 = vrot.lane.b32.xlu1 %v629_v38, %s971_s23 }
 0xbfe   :  { %v662_v63 = vpop.permute.xlu0 %661 }
 0xbff   :  { %v664_v1 = vmul.f32 %v1035_v10, %v662_v63 }
 0xc01   :  { %v665_v8 = vadd.f32 %v1042_v12, %v664_v1  ;;  %v126_v12 = vperm.slane %v1068_v55, 1 }
 0xc6b   :  { %v632_v42 = vpop.permute.xlu1 %631 }
 0xc6c   :  { %v1198_v43 = vadd.f32 %v632_v42, %v624_v40  ;;  %v380_v40 = vperm.slane %v1136_v19, 0  ;;  %v474_v42 = vperm.slane %v1158_v6, 1 }
 0xc6e   :  { %956 = vtanh.f32 %v1198_v43 }
 0xc74   :  { %v957_v44 = vpop.eup %956 }
 0xc75   :  { %637 = vrot.lane.b32.xlu2 %v957_v44, %s971_s23 }
 0xccf   :  { %v638_v49 = vpop.permute.xlu2 %637 }
 0xcd0   :  { %v1205_v50 = vmul.f32 %v638_v49, %v621_v37  ;;  %v206_v37 = vperm.slane %v1092_v41, 0  ;;  %v467_v49 = vperm.slane %v1158_v6, 0 }
 0xcd2   :  { %674 = vperm.xlu2 %880, %v1205_v50   ;;  %668 = vperm.xlu1 %879, %v1205_v50   ;;  %v641_v41 = vperm.slane %v1205_v50, 0 }
 0xcda   :  { %882 = vset.pattern.permute.xlu2 %v975_v56  ;;  %881 = vset.pattern.permute.xlu1 %v976_v57  ;;  %v554_v56 = vperm.slane %v1180_v60, 0  ;;  %v648_v57 = vperm.slane %v1205_v50, 1 }
 0xcdb   :  { %686 = vperm.xlu2 %882, %v1205_v50   ;;  %680 = vperm.xlu1 %881, %v1205_v50   ;;  %v561_v50 = vperm.slane %v1180_v60, 1 }
 0xce3   :  { %883 = vset.pattern.permute.xlu2 %v122_v48  ;;  %885 = vset.pattern.permute.xlu1 %v122_v48 }
 0xceb   :  { %124 = vperm.xlu2 %883, %v119_v51  }
 0xcf3   :  { %218 = vperm.xlu2 %883, %v213_v54  }
 0xcfb   :  { %305 = vperm.xlu2 %883, %v300_v58  }
 0xd03   :  { %392 = vperm.xlu2 %883, %v387_v59  }
 0xd0b   :  { %559 = vperm.xlu2 %883, %v554_v56  }
 0xd13   :  { %653 = vperm.xlu2 %883, %v648_v57   ;;  %v757_v57 = vld [vmem:[%s1272_s5] sm:$0x1f] }
 0xd1b   :  { %886 = vset.pattern.permute.xlu2 %v966_v0 }
 0xd1c   :  { %767 = vperm.xlu2 %886, %v756_v30  }
 0xd24   :  { %889 = vset.pattern.permute.xlu2 %v970_v7 }
 0xd25   :  { %791 = vperm.xlu2 %889, %v756_v30  }
 0xd2c   :  { %v675_v61 = vpop.permute.xlu2 %674 }
 0xd2d   :  { %v677_v14 = vmul.f32 %v675_v61, %v1047_v18 }
 0xd35   :  { %v687_v62 = vpop.permute.xlu2 %686 }
 0xd36   :  { %v689_v53 = vmul.f32 %v687_v62, %v1051_v21 }
 0xd44   :  { %v669_v3 = vpop.permute.xlu1 %668 }
 0xd45   :  { %v125_v5 = vpop.permute.xlu2 %124  ;;  %v671_v9 = vmul.f32 %v669_v3, %v1037_v11 }
 0xd46   :  { %134 = vst.msk [vmem:[#allocation4] sm:$0xf] %vm133_vm14, %v125_v5 }
 0xd47   :  { %v672_v13 = vadd.f32 %v671_v9, %v665_v8 }
 0xd49   :  { %v678_v16 = vadd.f32 %v677_v14, %v672_v13 }
 0xd4d   :  { %v681_v15 = vpop.permute.xlu1 %680  ;;  %v219_v27 = vpop.permute.xlu2 %218 }
 0xd4e   :  { %v683_v52 = vmul.f32 %v681_v15, %v1049_v20 }
 0xd50   :  { %v684_v17 = vadd.f32 %v683_v52, %v678_v16 }
 0xd52   :  { %v690_v10 = vadd.f32 %v689_v53, %v684_v17 }
 0xd54   :  { %958 = vtanh.f32 %v690_v10  ;;  %v826_v11 = vmul.f32 -1.442695, %v690_v10 }
 0xd55   :  { %v306_v34 = vpop.permute.xlu2 %305 }
 0xd56   :  { %960 = vpow2.f32 %v826_v11 }
 0xd5a   :  { %v959_v22 = vpop.eup %958 }
 0xd5b   :  { %713 = vrot.lane.b32.xlu0 %v959_v22, %s972_s1 }
 0xd5c   :  { %v961_v23 = vpop.eup %960 }
 0xd5d   :  { %v694_v24 = vadd.f32 1.0, %v961_v23  ;;  %v393_v38 = vpop.permute.xlu2 %392 }
 0xd5f   :  { %962 = vrcp.f32 %v694_v24  ;;  %v706_v28 = vand.u32 2147483648, %v694_v24  ;;  %vm700_vm1 = vweird.f32 %v694_v24  ;;  %v704_v29 = vand.u32 2147483647, %v694_v24 }
 0xd61   :  { %v707_v32 = vor.u32 1.1754944e-38, %v706_v28  ;;  %vm705_vm3 = vcmp.eq.f32.partialorder %v704_v29, 8.507059e+37 }
 0xd63   :  { %131 = vperm.xlu0 %884, %v126_v12  }
 0xd65   :  { %v963_v18 = vpop.eup %962  ;;  %v560_v7 = vpop.permute.xlu2 %559 }
 0xd66   :  { %v696_v25 = vmul.f32 %v963_v18, %v694_v24  ;;  %vm701_vm15 = vweird.f32 %v963_v18 }
 0xd67   :  { %vm702_vm2 = vmor %vm700_vm1, %vm701_vm15 }
 0xd68   :  { %v697_v26 = vsub.f32 1.0, %v696_v25 }
 0xd6a   :  { %v698_v20 = vmul.f32 %v963_v18, %v697_v26 }
 0xd6c   :  { %v699_v21 = vadd.f32 %v963_v18, %v698_v20 }
 0xd6d   :  { %v654_v62 = vpop.permute.xlu2 %653 }
 0xd6e   :  { %v703_v31 = vsel %vm702_vm2, %v963_v18, %v699_v21 }
 0xd6f   :  { %v708_v33 = vsel %vm705_vm3, %v707_v32, %v703_v31 }
 0xd70   :  { %v711_v44 = vmul.f32 %v708_v33, %v1198_v43 }
 0xd76   :  { %v768_v63 = vpop.permute.xlu2 %767 }
 0xd7f   :  { %v792_v1 = vpop.permute.xlu2 %791 }
 0xdcd   :  { %v714_v55 = vpop.permute.xlu0 %713 }
 0xdce   :  { %v716_v35 = vmul.f32 %v714_v55, %v708_v33 }
 0xdd0   :  { %718 = vrot.lane.b32.xlu1 %v716_v35, %s971_s23 }
 0xdd5   :  { %v132_v36 = vpop.permute.xlu0 %131 }
 0xdd6   :  { %135 = vst.msk [vmem:[#allocation4 + $0x4] sm:$0xf] %vm133_vm14, %v132_v36 }
 0xdd7   :  { %222 = vst.msk [vmem:[#allocation4 + $0x4] sm:$0xf] %vm220_vm4, %v219_v27 }
 0xdd8   :  { %211 = vperm.xlu1 %885, %v206_v37   ;;  %309 = vst.msk [vmem:[#allocation4 + $0x4] sm:$0xf] %vm307_vm5, %v306_v34 }
 0xdd9   :  { %396 = vst.msk [vmem:[#allocation4 + $0x4] sm:$0xf] %vm394_vm6, %v393_v38 }
 0xde0   :  { %298 = vperm.xlu1 %885, %v293_v39  }
 0xde8   :  { %385 = vperm.xlu1 %885, %v380_v40  }
 0xdf0   :  { %479 = vperm.xlu1 %885, %v474_v42  }
 0xdf8   :  { %646 = vperm.xlu1 %885, %v641_v41  }
 0xe42   :  { %v719_v45 = vpop.permute.xlu1 %718 }
 0xe43   :  { %v721_v46 = vadd.f32 %v719_v45, %v711_v44 }
 0xe45   :  { %964 = vtanh.f32 %v721_v46 }
 0xe4a   :  { %v212_v47 = vpop.permute.xlu1 %211 }
 0xe4b   :  { %v965_v48 = vpop.eup %964  ;;  %221 = vst.msk [vmem:[#allocation4] sm:$0xf] %vm220_vm4, %v212_v47 }
 0xe4c   :  { %724 = vrot.lane.b32.xlu0 %v965_v48, %s971_s23 }
 0xe52   :  { %v299_v19 = vpop.permute.xlu1 %298 }
 0xe53   :  { %308 = vst.msk [vmem:[#allocation4] sm:$0xf] %vm307_vm5, %v299_v19 }
 0xe54   :  { %472 = vperm.xlu0 %884, %v467_v49  }
 0xe5a   :  { %v386_v43 = vpop.permute.xlu1 %385 }
 0xe5b   :  { %395 = vst.msk [vmem:[#allocation4] sm:$0xf] %vm394_vm6, %v386_v43 }
 0xe5c   :  { %566 = vperm.xlu0 %884, %v561_v50  }
 0xe62   :  { %v480_v51 = vpop.permute.xlu1 %479 }
 0xe63   :  { %483 = vst.msk [vmem:[#allocation4 + $0x4] sm:$0xf] %vm481_vm7, %v480_v51 }
 0xe6a   :  { %v647_v60 = vpop.permute.xlu1 %646 }
 0xebe   :  { %v725_v54 = vpop.permute.xlu0 %724 }
 0xebf   :  { %v727_v58 = vmul.f32 %v725_v54, %v708_v33 }
 0xec1   :  { %746 = vrot.lane.b32.xlu2 %v727_v58, %s981_s4  ;;  %v728_v6 = vperm.slane %v727_v58, 0  ;;  %v735_v59 = vperm.slane %v727_v58, 1 }
 0xec3   :  { %733 = vperm.xlu0 %884, %v728_v6   ;;  %740 = vperm.xlu1 %885, %v735_v59  }
 0xec6   :  { %v473_v56 = vpop.permute.xlu0 %472 }
 0xec7   :  { %482 = vst.msk [vmem:[#allocation4] sm:$0xf] %vm481_vm7, %v473_v56 }
 0xec8   :  { %569 = vst.msk [vmem:[#allocation4] sm:$0xf] %vm568_vm8, %v560_v7 }
 0xec9   :  { %656 = vst.msk [vmem:[#allocation4] sm:$0xf] %vm655_vm9, %v647_v60 }
 0xecb   :  { %887 = vset.pattern.permute.xlu0 %v966_v0  ;;  %888 = vset.pattern.permute.xlu1 %v967_v2 }
 0xecc   :  { %760 = vperm.xlu0 %887, %v757_v57   ;;  %779 = vperm.xlu1 %888, %v756_v30  }
 0xece   :  { %v567_v61 = vpop.permute.xlu0 %566 }
 0xecf   :  { %570 = vst.msk [vmem:[#allocation4 + $0x4] sm:$0xf] %vm568_vm8, %v567_v61 }
 0xed0   :  { %657 = vst.msk [vmem:[#allocation4 + $0x4] sm:$0xf] %vm655_vm9, %v654_v62 }
 0xed4   :  { %752 = vrot.lane.b32.xlu0 %v721_v46, %s982_s21  ;;  %890 = vset.pattern.permute.xlu1 %v969_v4 }
 0xed5   :  { %803 = vperm.xlu1 %890, %v756_v30   ;;  %891 = vset.pattern.permute.xlu0 %v969_v4 }
 0xf1b   :  { %v747_v3 = vpop.permute.xlu2 %746 }
 0xf1c   :  { %750 = vst.msk [vmem:[#allocation2] sm:$0x3] %vm27_vm0, %v747_v3 }
 0xf35   :  { %v734_v0 = vpop.permute.xlu0 %733  ;;  %v741_v2 = vpop.permute.xlu1 %740 }
 0xf36   :  { %743 = vst.msk [vmem:[#allocation4] sm:$0xf] %vm742_vm10, %v734_v0 }
 0xf37   :  { %744 = vst.msk [vmem:[#allocation4 + $0x4] sm:$0xf] %vm742_vm10, %v741_v2 }
 0xf3d   :  { %v894_v5 = vld [vmem:[#allocation4] ss:$0 sm:$0xff]  ;;  %v896_v15 = vld [vmem:[#allocation4 + $0x1] ss:$0 sm:$0xff]  ;;  %v898_v22 = vld [vmem:[#allocation4 + $0x2] ss:$0 sm:$0xff] }
 0xf3e   :  { %v761_v8 = vpop.permute.xlu0 %760  ;;  %v895_v9 = vld [vmem:[#allocation4 + $0x4] ss:$0 sm:$0xff]  ;;  %v780_v13 = vpop.permute.xlu1 %779  ;;  %v772_v14 = vmul.f32 %v894_v5, %v768_v63  ;;  %v897_v16 = vld [vmem:[#allocation4 + $0x5] ss:$0 sm:$0xff]  ;;  %v899_v12 = vld [vmem:[#allocation4 + $0x6] ss:$0 sm:$0xff]  ;;  %v796_v18 = vmul.f32 %v898_v22, %v792_v1 }
 0xf3f   :  { %v773_v52 = vmul.f32 %v895_v9, %v768_v63  ;;  %v784_v17 = vmul.f32 %v896_v15, %v780_v13  ;;  %v785_v10 = vmul.f32 %v897_v16, %v780_v13  ;;  %v797_v25 = vmul.f32 %v899_v12, %v792_v1  ;;  %v900_v26 = vld [vmem:[#allocation4 + $0x3] ss:$0 sm:$0xff]  ;;  %v901_v20 = vld [vmem:[#allocation4 + $0x7] ss:$0 sm:$0xff] }
 0xf40   :  { %v774_v53 = vadd.f32 %v772_v14, %v761_v8 }
 0xf41   :  { %v775_v4 = vadd.f32 %v773_v52, %v761_v8 }
 0xf42   :  { %v786_v11 = vadd.f32 %v784_v17, %v774_v53 }
 0xf43   :  { %v787_v23 = vadd.f32 %v785_v10, %v775_v4 }
 0xf44   :  { %v798_v21 = vadd.f32 %v796_v18, %v786_v11 }
 0xf45   :  { %v799_v28 = vadd.f32 %v797_v25, %v787_v23 }
 0xf46   :  { %v753_v24 = vpop.permute.xlu0 %752 }
 0xf47   :  { %755 = vst.msk [vmem:[#allocation3] sm:$0x3] %vm27_vm0, %v753_v24  ;;  %v804_v27 = vpop.permute.xlu1 %803 }
 0xf48   :  { %v808_v29 = vmul.f32 %v900_v26, %v804_v27  ;;  %v809_v31 = vmul.f32 %v901_v20, %v804_v27 }
 0xf4a   :  { %v810_v32 = vadd.f32 %v808_v29, %v798_v21  ;;  %v811_v55 = vadd.f32 %v809_v31, %v799_v28 }
 0xf4c   :  { %813 = vst.msk [vmem:[%s1273_s6] sm:$0x1f] %vm812_vm11, %v810_v32 }
 0xf4d   :  { %814 = vst.msk [vmem:[%s1273_s6 + $0x8] sm:$0x1f] %vm812_vm11, %v811_v55 }

</bundles_post_ra>
